<compile_context>
chip_gen: v7x
topology: tpu7x:2x2x1
jax: 0.10.0
libtpu: 0.0.40
codegen_flags: <defaults>
</compile_context>

<pallas_src>
import math
import functools

import jax
import jax.numpy as jnp
from jax import lax
from jax.experimental import pallas as pl
from jax.experimental.pallas import tpu as pltpu


def _round_up(x, m):
    return ((x + m - 1) // m) * m


def _vmem_limit_bytes():
    """Pick a per-generation VMEM budget (conservative if query unavailable)."""
    try:
        info = pltpu.get_tpu_info()
        cap = getattr(info, "vmem_capacity_bytes", None)
        if cap is None:
            cap = 64 * 1024 * 1024
    except Exception:
        cap = 64 * 1024 * 1024          # assume v7x-like 64 MiB if unknown
    return max(32 * 1024 * 1024, int(cap * 3 // 4))


_VMEM_LIMIT = _vmem_limit_bytes()


def _pick_tile(dim, max_tile):
    """Return (tile, padded_dim). Small dims use a full-extent block (no pad)."""
    if dim <= max_tile:
        return dim, dim
    return max_tile, _round_up(dim, max_tile)


# ----------------------------------------------------------------------------
# Tiled linear kernel: y = act(x @ w + b), bf16 in, f32 accumulate
# ----------------------------------------------------------------------------
def _linear_kernel(x_ref, w_ref, b_ref, o_ref, acc_ref, *, activation):
    @pl.when(pl.program_id(2) == 0)
    def _():
        acc_ref[...] = jnp.zeros_like(acc_ref)

    acc_ref[...] += jnp.dot(x_ref[...], w_ref[...],
                            preferred_element_type=jnp.float32)

    @pl.when(pl.program_id(2) == pl.num_programs(2) - 1)
    def _():
        y = acc_ref[...] + b_ref[...].astype(jnp.float32)
        if activation == "relu":
            y = jnp.maximum(y, 0.0)
        o_ref[...] = y.astype(o_ref.dtype)


# Linear with residual-add + LayerNorm fused into the finalize epilogue.
def _linear_ln_kernel(x_ref, w_ref, b_ref, r_ref, g_ref, beta_ref,
                      o_ref, acc_ref, *, eps):
    @pl.when(pl.program_id(1) == 0)
    def _():
        acc_ref[...] = jnp.zeros_like(acc_ref)

    acc_ref[...] += jnp.dot(x_ref[...], w_ref[...],
                            preferred_element_type=jnp.float32)

    @pl.when(pl.program_id(1) == pl.num_programs(1) - 1)
    def _():
        y = acc_ref[...] + b_ref[...].astype(jnp.float32)
        y = y + r_ref[...].astype(jnp.float32)
        mu = jnp.mean(y, axis=-1, keepdims=True)
        yc = y - mu
        var = jnp.mean(yc * yc, axis=-1, keepdims=True)
        z = yc * lax.rsqrt(var + eps)
        z = z * g_ref[...].astype(jnp.float32) + beta_ref[...].astype(jnp.float32)
        o_ref[...] = z.astype(o_ref.dtype)


def pallas_linear(x, w, b, *, activation=None, residual=None, ln_g=None,
                  ln_b=None, ln_eps=1e-5, out_dtype=jnp.bfloat16,
                  tm_max=256, tn_max=256, tk_max=512):
    """x: (M, K), w: (K, N) bf16, b: (1, N) f32 -> (M, N).

    If `residual`/`ln_g`/`ln_b` are given, computes layernorm(x @ w + b +
    residual) with the add+LN fused into the matmul epilogue (requires the
    full N dimension in one block).
    """
    M, K = x.shape
    N = w.shape[1]
    fuse_ln = residual is not None

    tm, Mp = _pick_tile(M, tm_max)
    tk, Kp = _pick_tile(K, tk_max)
    if fuse_ln:
        # LN needs the whole feature dim in one block (and unpadded so the
        # mean/variance are not polluted by zero columns).
        assert N <= tn_max or N % 128 == 0, "fused LN needs full/aligned N"
        tn, Np = N if N <= tn_max else _round_up(N, 128), N
        tn = Np = N
    else:
        tn, Np = _pick_tile(N, tn_max)

    xp = x.astype(jnp.bfloat16)
    if (Mp, Kp) != (M, K):
        xp = jnp.pad(xp, ((0, Mp - M), (0, Kp - K)))
    wp = w.astype(jnp.bfloat16)
    if (Kp, Np) != (K, N):
        wp = jnp.pad(wp, ((0, Kp - K), (0, Np - N)))
    bp = b.astype(jnp.float32)
    if Np != N:
        bp = jnp.pad(bp, ((0, 0), (0, Np - N)))

    if fuse_ln:
        rp = residual.astype(jnp.bfloat16)
        if Mp != M:
            rp = jnp.pad(rp, ((0, Mp - M), (0, 0)))
        out = pl.pallas_call(
            functools.partial(_linear_ln_kernel, eps=ln_eps),
            out_shape=jax.ShapeDtypeStruct((Mp, Np), out_dtype),
            grid=(Mp // tm, Kp // tk),
            in_specs=[
                pl.BlockSpec((tm, tk), lambda i, k: (i, k)),
                pl.BlockSpec((tk, Np), lambda i, k: (k, 0)),
                pl.BlockSpec((1, Np), lambda i, k: (0, 0)),
                pl.BlockSpec((tm, Np), lambda i, k: (i, 0)),
                pl.BlockSpec((1, Np), lambda i, k: (0, 0)),
                pl.BlockSpec((1, Np), lambda i, k: (0, 0)),
            ],
            out_specs=pl.BlockSpec((tm, Np), lambda i, k: (i, 0)),
            scratch_shapes=[pltpu.VMEM((tm, Np), jnp.float32)],
            compiler_params=pltpu.CompilerParams(
                dimension_semantics=("parallel", "arbitrary"),
                vmem_limit_bytes=_VMEM_LIMIT),
        )(xp, wp, bp, rp, ln_g, ln_b)
    else:
        out = pl.pallas_call(
            functools.partial(_linear_kernel, activation=activation),
            out_shape=jax.ShapeDtypeStruct((Mp, Np), out_dtype),
            grid=(Mp // tm, Np // tn, Kp // tk),
            in_specs=[
                pl.BlockSpec((tm, tk), lambda i, j, k: (i, k)),
                pl.BlockSpec((tk, tn), lambda i, j, k: (k, j)),
                pl.BlockSpec((1, tn), lambda i, j, k: (0, j)),
            ],
            out_specs=pl.BlockSpec((tm, tn), lambda i, j, k: (i, j)),
            scratch_shapes=[pltpu.VMEM((tm, tn), jnp.float32)],
            compiler_params=pltpu.CompilerParams(
                dimension_semantics=("parallel", "parallel", "arbitrary"),
                vmem_limit_bytes=_VMEM_LIMIT),
        )(xp, wp, bp)

    if (Mp, Np) != (M, N):
        out = out[:M, :N]
    return out


# ----------------------------------------------------------------------------
# Fused FFN kernel: LN(relu(x @ w1 + b1) @ w2 + b2 + residual)
#   - ff_dim tiled on the inner grid axis (single step when it fits -> w1/w2
#     blocks keep a constant index over the row axis and stay resident).
#   - residual add + LayerNorm fused into the finalize epilogue.
# ----------------------------------------------------------------------------
def _ffn_kernel(x_ref, w1_ref, b1_ref, w2_ref, b2_ref, r_ref, g_ref, beta_ref,
                o_ref, acc_ref, *, eps):
    @pl.when(pl.program_id(1) == 0)
    def _():
        acc_ref[...] = jnp.zeros_like(acc_ref)

    h = jnp.dot(x_ref[...], w1_ref[...], preferred_element_type=jnp.float32)
    h = jnp.maximum(h + b1_ref[...].astype(jnp.float32), 0.0)
    acc_ref[...] += jnp.dot(h.astype(jnp.bfloat16), w2_ref[...],
                            preferred_element_type=jnp.float32)

    @pl.when(pl.program_id(1) == pl.num_programs(1) - 1)
    def _():
        y = acc_ref[...] + b2_ref[...].astype(jnp.float32)
        y = y + r_ref[...].astype(jnp.float32)
        mu = jnp.mean(y, axis=-1, keepdims=True)
        yc = y - mu
        var = jnp.mean(yc * yc, axis=-1, keepdims=True)
        z = yc * lax.rsqrt(var + eps)
        z = z * g_ref[...].astype(jnp.float32) + beta_ref[...].astype(jnp.float32)
        o_ref[...] = z.astype(o_ref.dtype)


def pallas_ffn(x, w1, b1, w2, b2, residual, ln_g, ln_b, *, eps=1e-5,
               out_dtype=jnp.bfloat16, tm_max=256, tf_max=1024):
    """x, residual: (M, D); w1: (D, F), w2: (F, D) -> LN(ffn(x) + residual)."""
    M, D = x.shape
    F = w1.shape[1]
    tm, Mp = _pick_tile(M, tm_max)
    tf, Fp = _pick_tile(F, tf_max)

    xp = x.astype(jnp.bfloat16)
    rp = residual.astype(jnp.bfloat16)
    if Mp != M:
        xp = jnp.pad(xp, ((0, Mp - M), (0, 0)))
        rp = jnp.pad(rp, ((0, Mp - M), (0, 0)))
    w1p = w1.astype(jnp.bfloat16)
    b1p = b1.astype(jnp.float32)
    w2p = w2.astype(jnp.bfloat16)
    if Fp != F:
        w1p = jnp.pad(w1p, ((0, 0), (0, Fp - F)))
        b1p = jnp.pad(b1p, ((0, 0), (0, Fp - F)))
        w2p = jnp.pad(w2p, ((0, Fp - F), (0, 0)))
    b2p = b2.astype(jnp.float32)

    out = pl.pallas_call(
        functools.partial(_ffn_kernel, eps=eps),
        out_shape=jax.ShapeDtypeStruct((Mp, D), out_dtype),
        grid=(Mp // tm, Fp // tf),
        in_specs=[
            pl.BlockSpec((tm, D), lambda i, f: (i, 0)),
            pl.BlockSpec((D, tf), lambda i, f: (0, f)),
            pl.BlockSpec((1, tf), lambda i, f: (0, f)),
            pl.BlockSpec((tf, D), lambda i, f: (f, 0)),
            pl.BlockSpec((1, D), lambda i, f: (0, 0)),
            pl.BlockSpec((tm, D), lambda i, f: (i, 0)),
            pl.BlockSpec((1, D), lambda i, f: (0, 0)),
            pl.BlockSpec((1, D), lambda i, f: (0, 0)),
        ],
        out_specs=pl.BlockSpec((tm, D), lambda i, f: (i, 0)),
        scratch_shapes=[pltpu.VMEM((tm, D), jnp.float32)],
        compiler_params=pltpu.CompilerParams(
            dimension_semantics=("parallel", "arbitrary"),
            vmem_limit_bytes=_VMEM_LIMIT),
    )(xp, w1p, b1p, w2p, b2p, rp, ln_g, ln_b)
    if Mp != M:
        out = out[:M]
    return out


# ----------------------------------------------------------------------------
# Attention kernel: per-batch grid step, heads sliced from the lane dim.
#  - Q scaled once before the head loop.
#  - scores via lax.dot_general (no K transpose materialized).
#  - causal mask applied with jnp.where (built once per grid step).
#  - per-head outputs concatenated in-register -> one lane-dense output store.
# ----------------------------------------------------------------------------
def _attention_kernel(q_ref, k_ref, v_ref, o_ref, *, num_heads, scale, causal):
    _, Sq, D = q_ref.shape
    Sk = k_ref.shape[1]
    dh = D // num_heads

    q = q_ref[0] * scale              # (Sq, D) bf16
    k = k_ref[0]                      # (Sk, D) bf16
    v = v_ref[0]                      # (Sk, D) bf16

    if causal:
        row = lax.broadcasted_iota(jnp.int32, (Sq, Sk), 0)
        col = lax.broadcasted_iota(jnp.int32, (Sq, Sk), 1)
        allow = row >= col

    outs = []
    for h in range(num_heads):
        sl = slice(h * dh, (h + 1) * dh)
        qh, kh, vh = q[:, sl], k[:, sl], v[:, sl]
        # (Sq, dh) x (Sk, dh) contracting last dims -> (Sq, Sk), no transpose.
        s = lax.dot_general(qh, kh, (((1,), (1,)), ((), ())),
                            preferred_element_type=jnp.float32)
        if causal:
            s = jnp.where(allow, s, -1e30)
        s = s - jnp.max(s, axis=-1, keepdims=True)
        p = jnp.exp(s)
        p = p * pl.reciprocal(jnp.sum(p, axis=-1, keepdims=True), approx=True)
        outs.append(jnp.dot(p.astype(v.dtype), vh,
                            preferred_element_type=jnp.float32))
    # Single full-width store of the whole (Sq, D) output block.
    o_ref[0] = jnp.concatenate(outs, axis=-1).astype(o_ref.dtype)
    # TODO(synk): for long sequences, tile Sk flash-style (running max/sum/acc
    # scratch) and add a parallel Sq grid axis (keeps v7x's 2 TCs busy and
    # bounds the O(S^2) score tile in 64 MiB VMEM).


def pallas_attention(q, k, v, num_heads, causal):
    """q: (B, Sq, D), k/v: (B, Sk, D), D = num_heads * head_dim."""
    B, Sq, D = q.shape
    Sk = k.shape[1]
    scale = 1.0 / math.sqrt(D // num_heads)
    return pl.pallas_call(
        functools.partial(_attention_kernel, num_heads=num_heads,
                          scale=scale, causal=causal),
        out_shape=jax.ShapeDtypeStruct((B, Sq, D), jnp.bfloat16),
        grid=(B,),
        in_specs=[
            pl.BlockSpec((1, Sq, D), lambda b: (b, 0, 0)),
            pl.BlockSpec((1, Sk, D), lambda b: (b, 0, 0)),
            pl.BlockSpec((1, Sk, D), lambda b: (b, 0, 0)),
        ],
        out_specs=pl.BlockSpec((1, Sq, D), lambda b: (b, 0, 0)),
        compiler_params=pltpu.CompilerParams(
            dimension_semantics=("parallel",),
            vmem_limit_bytes=_VMEM_LIMIT),
    )(q.astype(jnp.bfloat16), k.astype(jnp.bfloat16), v.astype(jnp.bfloat16))


# ----------------------------------------------------------------------------
# Parameter init (mirrors nn.Linear / nn.Embedding defaults; weights in bf16)
# ----------------------------------------------------------------------------
def init_linear(key, in_dim, out_dim):
    k1, k2 = jax.random.split(key)
    bound = 1.0 / math.sqrt(in_dim)
    w = jax.random.uniform(k1, (in_dim, out_dim), jnp.float32, -bound, bound)
    b = jax.random.uniform(k2, (1, out_dim), jnp.float32, -bound, bound)
    return {"w": w.astype(jnp.bfloat16), "b": b}


def init_layernorm(dim):
    return {"g": jnp.ones((1, dim), jnp.float32),
            "b": jnp.zeros((1, dim), jnp.float32)}


def init_self_mha(key, dim):
    ks = jax.random.split(key, 4)
    wq = init_linear(ks[0], dim, dim)
    wk = init_linear(ks[1], dim, dim)
    wv = init_linear(ks[2], dim, dim)
    return {
        "wqkv": {"w": jnp.concatenate([wq["w"], wk["w"], wv["w"]], axis=1),
                 "b": jnp.concatenate([wq["b"], wk["b"], wv["b"]], axis=1)},
        "wo": init_linear(ks[3], dim, dim),
    }


def init_cross_mha(key, dim):
    ks = jax.random.split(key, 4)
    wk = init_linear(ks[1], dim, dim)
    wv = init_linear(ks[2], dim, dim)
    return {
        "wq": init_linear(ks[0], dim, dim),
        "wkv": {"w": jnp.concatenate([wk["w"], wv["w"]], axis=1),
                "b": jnp.concatenate([wk["b"], wv["b"]], axis=1)},
        "wo": init_linear(ks[3], dim, dim),
    }


def init_encoder_layer(key, dim, ff_dim):
    ks = jax.random.split(key, 3)
    return {
        "attn": init_self_mha(ks[0], dim),
        "ln1": init_layernorm(dim),
        "ff1": init_linear(ks[1], dim, ff_dim),
        "ff2": init_linear(ks[2], ff_dim, dim),
        "ln2": init_layernorm(dim),
    }


def init_decoder_layer(key, dim, ff_dim):
    ks = jax.random.split(key, 4)
    return {
        "self_attn": init_self_mha(ks[0], dim),
        "ln1": init_layernorm(dim),
        "cross_attn": init_cross_mha(ks[1], dim),
        "ln2": init_layernorm(dim),
        "ff1": init_linear(ks[2], dim, ff_dim),
        "ff2": init_linear(ks[3], ff_dim, dim),
        "ln3": init_layernorm(dim),
    }


def sinusoidal_pe(max_length, dim):
    pos = jnp.arange(max_length, dtype=jnp.float32)[:, None]
    i = jnp.arange(dim, dtype=jnp.float32)[None, :]
    angle = pos / jnp.power(10000.0, (2.0 * jnp.floor(i / 2.0)) / dim)
    return jnp.where((jnp.arange(dim) % 2) == 0, jnp.sin(angle), jnp.cos(angle))


def init_transformer(key, src_vocab, tgt_vocab, dim, max_length, num_layers, ff_dim):
    ks = jax.random.split(key, 3 + 2 * num_layers)
    return {
        "src_emb": jax.random.normal(ks[0], (src_vocab, dim), jnp.float32),
        "tgt_emb": jax.random.normal(ks[1], (tgt_vocab, dim), jnp.float32),
        "pe": sinusoidal_pe(max_length, dim),
        "enc_layers": [init_encoder_layer(ks[3 + l], dim, ff_dim)
                       for l in range(num_layers)],
        "dec_layers": [init_decoder_layer(ks[3 + num_layers + l], dim, ff_dim)
                       for l in range(num_layers)],
        "fc": init_linear(ks[2], dim, tgt_vocab),
    }


# ----------------------------------------------------------------------------
# Model forward (glue in JAX, hot path in Pallas kernels above)
# ----------------------------------------------------------------------------
def self_mha_block(x2d, B, S, D, p, ln, num_heads, causal):
    """Fused QKV proj -> attention -> (wo proj + residual + LN) fused."""
    qkv = pallas_linear(x2d, p["wqkv"]["w"], p["wqkv"]["b"])
    q = qkv[:, :D].reshape(B, S, D)
    k = qkv[:, D:2 * D].reshape(B, S, D)
    v = qkv[:, 2 * D:].reshape(B, S, D)
    o = pallas_attention(q, k, v, num_heads, causal)
    return pallas_linear(o.reshape(B * S, D), p["wo"]["w"], p["wo"]["b"],
                         residual=x2d, ln_g=ln["g"], ln_b=ln["b"])


def cross_mha_block(x2d, enc2d, B, Sq, Sk, D, p, ln, num_heads):
    q = pallas_linear(x2d, p["wq"]["w"], p["wq"]["b"]).reshape(B, Sq, D)
    kv = pallas_linear(enc2d, p["wkv"]["w"], p["wkv"]["b"])
    k = kv[:, :D].reshape(B, Sk, D)
    v = kv[:, D:].reshape(B, Sk, D)
    o = pallas_attention(q, k, v, num_heads, causal=False)
    return pallas_linear(o.reshape(B * Sq, D), p["wo"]["w"], p["wo"]["b"],
                         residual=x2d, ln_g=ln["g"], ln_b=ln["b"])


def encoder_layer(x, p, num_heads):
    B, S, D = x.shape
    x2d = x.reshape(B * S, D)
    x2 = self_mha_block(x2d, B, S, D, p["attn"], p["ln1"], num_heads, causal=False)
    x3 = pallas_ffn(x2, p["ff1"]["w"], p["ff1"]["b"], p["ff2"]["w"], p["ff2"]["b"],
                    residual=x2, ln_g=p["ln2"]["g"], ln_b=p["ln2"]["b"])
    return x3.reshape(B, S, D)


def decoder_layer(x, enc_out, p, num_heads):
    B, S, D = x.shape
    Sk = enc_out.shape[1]
    x2d = x.reshape(B * S, D)
    enc2d = enc_out.reshape(B * Sk, D)
    # masked self-attention (tgt_mask = causal, generated in-kernel)
    x2 = self_mha_block(x2d, B, S, D, p["self_attn"], p["ln1"], num_heads,
                        causal=True)
    # cross-attention; src_mask in the reference is all-False -> no masking
    x3 = cross_mha_block(x2, enc2d, B, S, Sk, D, p["cross_attn"], p["ln2"],
                         num_heads)
    x4 = pallas_ffn(x3, p["ff1"]["w"], p["ff1"]["b"], p["ff2"]["w"], p["ff2"]["b"],
                    residual=x3, ln_g=p["ln3"]["g"], ln_b=p["ln3"]["b"])
    return x4.reshape(B, S, D)


@functools.partial(jax.jit, static_argnames=("num_heads",))
def transformer_forward(params, src, tgt, num_heads):
    D = params["src_emb"].shape[1]
    B, Ss = src.shape
    _, St = tgt.shape

    # --- encoder ---
    # TODO(synk): embedding gather stays in XLA (jnp.take); no Pallas gather here.
    x = jnp.take(params["src_emb"], src, axis=0) * math.sqrt(D)
    x = (x + params["pe"][None, :Ss, :]).astype(jnp.bfloat16)
    for lp in params["enc_layers"]:
        x = encoder_layer(x, lp, num_heads)
    enc_out = x

    # --- decoder ---
    y = jnp.take(params["tgt_emb"], tgt, axis=0) * math.sqrt(D)
    y = (y + params["pe"][None, :St, :]).astype(jnp.bfloat16)
    for lp in params["dec_layers"]:
        y = decoder_layer(y, enc_out, lp, num_heads)

    # --- final projection to tgt vocab (f32 out) ---
    out = pallas_linear(y.reshape(B * St, D), params["fc"]["w"], params["fc"]["b"],
                        out_dtype=jnp.float32)
    return out.reshape(B, St, -1)


# ----------------------------------------------------------------------------
if __name__ == "__main__":
    src_vocab, tgt_vocab = 16, 20
    embedding_dim, max_length = 32, 16
    num_layers, num_heads, ff_dim = 2, 4, 64
    B, S = 2, 8

    key = jax.random.PRNGKey(0)
    k_par, k_src, k_tgt = jax.random.split(key, 3)

    params = init_transformer(k_par, src_vocab, tgt_vocab, embedding_dim,
                              max_length, num_layers, ff_dim)
    src = jax.random.randint(k_src, (B, S), 0, src_vocab, dtype=jnp.int32)
    tgt = jax.random.randint(k_tgt, (B, S), 0, tgt_vocab, dtype=jnp.int32)

    out = transformer_forward(params, src, tgt, num_heads)
    out = jax.block_until_ready(out)
    assert out.shape == (B, S, tgt_vocab), out.shape
    assert bool(jnp.all(jnp.isfinite(out)))
    print("KERNEL_OK")
</pallas_src>

<mosaic_0001>
module attributes {stable_mosaic.version = 11 : i64} {
  func.func @_linear_kernel(%arg0: i32, %arg1: i32, %arg2: i32, %arg3: memref<16x32xbf16, #tpu.memory_space<vmem>>, %arg4: memref<32x96xbf16, #tpu.memory_space<vmem>>, %arg5: memref<1x96xf32, #tpu.memory_space<vmem>>, %arg6: memref<16x96xbf16, #tpu.memory_space<vmem>>, %arg7: memref<16x96xf32, #tpu.memory_space<vmem>>) attributes {dimension_semantics = [#tpu.dimension_semantics<parallel>, #tpu.dimension_semantics<parallel>, #tpu.dimension_semantics<arbitrary>], iteration_bounds = array<i64: 1, 1, 1>, scalar_prefetch = 0 : i64, scratch_operands = 1 : i64, tpu.core_type = #tpu.core_type<tc>, window_params = [{transform_indices = @transform_0, window_bounds = array<i64: 16, 32>}, {transform_indices = @transform_1, window_bounds = array<i64: 32, 96>}, {transform_indices = @transform_2, window_bounds = array<i64: 1, 96>}, {transform_indices = @transform_3, window_bounds = array<i64: 16, 96>}]} {
    %c0_i32 = arith.constant 0 : i32
    %0 = arith.cmpi eq, %arg2, %c0_i32 : i32
    %1 = arith.extui %0 : i1 to i32
    %c0_i32_0 = arith.constant 0 : i32
    %2 = arith.cmpi ne, %1, %c0_i32_0 : i32
    scf.if %2 {
      %cst_10 = arith.constant 0.000000e+00 : f32
      %12 = vector.broadcast %cst_10 : f32 to vector<16x96xf32>
      %c0_11 = arith.constant 0 : index
      %c0_12 = arith.constant 0 : index
      %13 = vector.load %arg7[%c0_11, %c0_12] : memref<16x96xf32, #tpu.memory_space<vmem>>, vector<16x96xf32>
      tpu.vector_store %arg7[%c0_11, %c0_12], %12 {strides = array<i32>} : memref<16x96xf32, #tpu.memory_space<vmem>>, vector<16x96xf32>,
    } else {
    }
    %c0 = arith.constant 0 : index
    %c0_1 = arith.constant 0 : index
    %3 = vector.load %arg7[%c0, %c0_1] : memref<16x96xf32, #tpu.memory_space<vmem>>, vector<16x96xf32>
    %c0_2 = arith.constant 0 : index
    %c0_3 = arith.constant 0 : index
    %4 = vector.load %arg3[%c0_2, %c0_3] : memref<16x32xbf16, #tpu.memory_space<vmem>>, vector<16x32xbf16>
    %c0_4 = arith.constant 0 : index
    %c0_5 = arith.constant 0 : index
    %5 = vector.load %arg4[%c0_4, %c0_5] : memref<32x96xbf16, #tpu.memory_space<vmem>>, vector<32x96xbf16>
    %cst = arith.constant dense<0.000000e+00> : vector<16x96xf32>
    %6 = tpu.matmul %4, %5, %cst {dimension_numbers = #tpu.dot_dimension_numbers<[1], [0], [0], [1], [0, 0, 1, 1], [], []>} : vector<16x32xbf16>, vector<32x96xbf16>, vector<16x96xf32> -> vector<16x96xf32>
    %7 = arith.addf %3, %6 : vector<16x96xf32>
    %c0_6 = arith.constant 0 : index
    %c0_7 = arith.constant 0 : index
    %8 = vector.load %arg7[%c0_6, %c0_7] : memref<16x96xf32, #tpu.memory_space<vmem>>, vector<16x96xf32>
    tpu.vector_store %arg7[%c0_6, %c0_7], %7 {strides = array<i32>} : memref<16x96xf32, #tpu.memory_space<vmem>>, vector<16x96xf32>,
    %c0_i32_8 = arith.constant 0 : i32
    %9 = arith.cmpi eq, %arg2, %c0_i32_8 : i32
    %10 = arith.extui %9 : i1 to i32
    %c0_i32_9 = arith.constant 0 : i32
    %11 = arith.cmpi ne, %10, %c0_i32_9 : i32
    scf.if %11 {
      %c0_10 = arith.constant 0 : index
      %c0_11 = arith.constant 0 : index
      %12 = vector.load %arg7[%c0_10, %c0_11] : memref<16x96xf32, #tpu.memory_space<vmem>>, vector<16x96xf32>
      %c0_12 = arith.constant 0 : index
      %c0_13 = arith.constant 0 : index
      %13 = vector.load %arg5[%c0_12, %c0_13] : memref<1x96xf32, #tpu.memory_space<vmem>>, vector<1x96xf32>
      %14 = vector.broadcast %13 : vector<1x96xf32> to vector<16x96xf32>
      %15 = arith.addf %12, %14 : vector<16x96xf32>
      %16 = arith.truncf %15 : vector<16x96xf32> to vector<16x96xbf16>
      %c0_14 = arith.constant 0 : index
      %c0_15 = arith.constant 0 : index
      %17 = vector.load %arg6[%c0_14, %c0_15] : memref<16x96xbf16, #tpu.memory_space<vmem>>, vector<16x96xbf16>
      tpu.vector_store %arg6[%c0_14, %c0_15], %16 {strides = array<i32>} : memref<16x96xbf16, #tpu.memory_space<vmem>>, vector<16x96xbf16>,
    } else {
    }
    return
  }
  func.func @transform_0(%arg0: i32, %arg1: i32, %arg2: i32) -> (i32, i32) {
    %c0_i32 = arith.constant 0 : i32
    return %arg0, %arg2 : i32, i32
  }
  func.func @transform_1(%arg0: i32, %arg1: i32, %arg2: i32) -> (i32, i32) {
    %c0_i32 = arith.constant 0 : i32
    return %arg2, %arg1 : i32, i32
  }
  func.func @transform_2(%arg0: i32, %arg1: i32, %arg2: i32) -> (i32, i32) {
    %c0_i32 = arith.constant 0 : i32
    %c0_i32_0 = arith.constant 0 : i32
    return %c0_i32, %arg1 : i32, i32
  }
  func.func @transform_3(%arg0: i32, %arg1: i32, %arg2: i32) -> (i32, i32) {
    %c0_i32 = arith.constant 0 : i32
    return %arg0, %arg1 : i32, i32
  }
}

module attributes {stable_mosaic.version = 11 : i64} {
  func.func @_linear_ln_kernel(%arg0: i32, %arg1: i32, %arg2: memref<16x32xbf16, #tpu.memory_space<vmem>>, %arg3: memref<32x32xbf16, #tpu.memory_space<vmem>>, %arg4: memref<1x32xf32, #tpu.memory_space<vmem>>, %arg5: memref<16x32xbf16, #tpu.memory_space<vmem>>, %arg6: memref<1x32xf32, #tpu.memory_space<vmem>>, %arg7: memref<1x32xf32, #tpu.memory_space<vmem>>, %arg8: memref<16x32xbf16, #tpu.memory_space<vmem>>, %arg9: memref<16x32xf32, #tpu.memory_space<vmem>>) attributes {dimension_semantics = [#tpu.dimension_semantics<parallel>, #tpu.dimension_semantics<arbitrary>], iteration_bounds = array<i64: 1, 1>, scalar_prefetch = 0 : i64, scratch_operands = 1 : i64, tpu.core_type = #tpu.core_type<tc>, window_params = [{transform_indices = @transform_0, window_bounds = array<i64: 16, 32>}, {transform_indices = @transform_1, window_bounds = array<i64: 32, 32>}, {pipeline_mode = #tpu.pipeline_mode<synchronous>, transform_indices = @transform_2, window_bounds = array<i64: 1, 32>}, {transform_indices = @transform_3, window_bounds = array<i64: 16, 32>}, {pipeline_mode = #tpu.pipeline_mode<synchronous>, transform_indices = @transform_4, window_bounds = array<i64: 1, 32>}, {pipeline_mode = #tpu.pipeline_mode<synchronous>, transform_indices = @transform_5, window_bounds = array<i64: 1, 32>}, {transform_indices = @transform_6, window_bounds = array<i64: 16, 32>}]} {
    %c0_i32 = arith.constant 0 : i32
    %0 = arith.cmpi eq, %arg1, %c0_i32 : i32
    %1 = arith.extui %0 : i1 to i32
    %c0_i32_0 = arith.constant 0 : i32
    %2 = arith.cmpi ne, %1, %c0_i32_0 : i32
    scf.if %2 {
      %cst_10 = arith.constant 0.000000e+00 : f32
      %12 = vector.broadcast %cst_10 : f32 to vector<16x32xf32>
      %c0_11 = arith.constant 0 : index
      %c0_12 = arith.constant 0 : index
      %13 = vector.load %arg9[%c0_11, %c0_12] : memref<16x32xf32, #tpu.memory_space<vmem>>, vector<16x32xf32>
      tpu.vector_store %arg9[%c0_11, %c0_12], %12 {strides = array<i32>} : memref<16x32xf32, #tpu.memory_space<vmem>>, vector<16x32xf32>,
    } else {
    }
    %c0 = arith.constant 0 : index
    %c0_1 = arith.constant 0 : index
    %3 = vector.load %arg9[%c0, %c0_1] : memref<16x32xf32, #tpu.memory_space<vmem>>, vector<16x32xf32>
    %c0_2 = arith.constant 0 : index
    %c0_3 = arith.constant 0 : index
    %4 = vector.load %arg2[%c0_2, %c0_3] : memref<16x32xbf16, #tpu.memory_space<vmem>>, vector<16x32xbf16>
    %c0_4 = arith.constant 0 : index
    %c0_5 = arith.constant 0 : index
    %5 = vector.load %arg3[%c0_4, %c0_5] : memref<32x32xbf16, #tpu.memory_space<vmem>>, vector<32x32xbf16>
    %cst = arith.constant dense<0.000000e+00> : vector<16x32xf32>
    %6 = tpu.matmul %4, %5, %cst {dimension_numbers = #tpu.dot_dimension_numbers<[1], [0], [0], [1], [0, 0, 1, 1], [], []>} : vector<16x32xbf16>, vector<32x32xbf16>, vector<16x32xf32> -> vector<16x32xf32>
    %7 = arith.addf %3, %6 : vector<16x32xf32>
    %c0_6 = arith.constant 0 : index
    %c0_7 = arith.constant 0 : index
    %8 = vector.load %arg9[%c0_6, %c0_7] : memref<16x32xf32, #tpu.memory_space<vmem>>, vector<16x32xf32>
    tpu.vector_store %arg9[%c0_6, %c0_7], %7 {strides = array<i32>} : memref<16x32xf32, #tpu.memory_space<vmem>>, vector<16x32xf32>,
    %c0_i32_8 = arith.constant 0 : i32
    %9 = arith.cmpi eq, %arg1, %c0_i32_8 : i32
    %10 = arith.extui %9 : i1 to i32
    %c0_i32_9 = arith.constant 0 : i32
    %11 = arith.cmpi ne, %10, %c0_i32_9 : i32
    scf.if %11 {
      %c0_10 = arith.constant 0 : index
      %c0_11 = arith.constant 0 : index
      %12 = vector.load %arg9[%c0_10, %c0_11] : memref<16x32xf32, #tpu.memory_space<vmem>>, vector<16x32xf32>
      %c0_12 = arith.constant 0 : index
      %c0_13 = arith.constant 0 : index
      %13 = vector.load %arg4[%c0_12, %c0_13] : memref<1x32xf32, #tpu.memory_space<vmem>>, vector<1x32xf32>
      %14 = vector.broadcast %13 : vector<1x32xf32> to vector<16x32xf32>
      %15 = arith.addf %12, %14 : vector<16x32xf32>
      %c0_14 = arith.constant 0 : index
      %c0_15 = arith.constant 0 : index
      %16 = vector.load %arg5[%c0_14, %c0_15] : memref<16x32xbf16, #tpu.memory_space<vmem>>, vector<16x32xbf16>
      %17 = arith.extf %16 : vector<16x32xbf16> to vector<16x32xf32>
      %18 = arith.addf %15, %17 : vector<16x32xf32>
      %cst_16 = arith.constant dense<0.000000e+00> : vector<16xf32>
      %19 = vector.multi_reduction <add>, %18, %cst_16 [1] : vector<16x32xf32> to vector<16xf32>
      %20 = vector.shape_cast %19 : vector<16xf32> to vector<16x1xf32>
      %cst_17 = arith.constant 3.200000e+01 : f32
      %21 = vector.broadcast %cst_17 : f32 to vector<16x1xf32>
      %22 = arith.divf %20, %21 : vector<16x1xf32>
      %23 = vector.broadcast %22 : vector<16x1xf32> to vector<16x32xf32>
      %24 = arith.subf %18, %23 : vector<16x32xf32>
      %25 = arith.mulf %24, %24 : vector<16x32xf32>
      %cst_18 = arith.constant dense<0.000000e+00> : vector<16xf32>
      %26 = vector.multi_reduction <add>, %25, %cst_18 [1] : vector<16x32xf32> to vector<16xf32>
      %27 = vector.shape_cast %26 : vector<16xf32> to vector<16x1xf32>
      %cst_19 = arith.constant 3.200000e+01 : f32
      %28 = vector.broadcast %cst_19 : f32 to vector<16x1xf32>
      %29 = arith.divf %27, %28 : vector<16x1xf32>
      %cst_20 = arith.constant 9.99999974E-6 : f32
      %30 = vector.broadcast %cst_20 : f32 to vector<16x1xf32>
      %31 = arith.addf %29, %30 : vector<16x1xf32>
      %32 = math.rsqrt %31 : vector<16x1xf32>
      %33 = vector.broadcast %32 : vector<16x1xf32> to vector<16x32xf32>
      %34 = arith.mulf %24, %33 : vector<16x32xf32>
      %c0_21 = arith.constant 0 : index
      %c0_22 = arith.constant 0 : index
      %35 = vector.load %arg6[%c0_21, %c0_22] : memref<1x32xf32, #tpu.memory_space<vmem>>, vector<1x32xf32>
      %36 = vector.broadcast %35 : vector<1x32xf32> to vector<16x32xf32>
      %37 = arith.mulf %34, %36 : vector<16x32xf32>
      %c0_23 = arith.constant 0 : index
      %c0_24 = arith.constant 0 : index
      %38 = vector.load %arg7[%c0_23, %c0_24] : memref<1x32xf32, #tpu.memory_space<vmem>>, vector<1x32xf32>
      %39 = vector.broadcast %38 : vector<1x32xf32> to vector<16x32xf32>
      %40 = arith.addf %37, %39 : vector<16x32xf32>
      %41 = arith.truncf %40 : vector<16x32xf32> to vector<16x32xbf16>
      %c0_25 = arith.constant 0 : index
      %c0_26 = arith.constant 0 : index
      %42 = vector.load %arg8[%c0_25, %c0_26] : memref<16x32xbf16, #tpu.memory_space<vmem>>, vector<16x32xbf16>
      tpu.vector_store %arg8[%c0_25, %c0_26], %41 {strides = array<i32>} : memref<16x32xbf16, #tpu.memory_space<vmem>>, vector<16x32xbf16>,
    } else {
    }
    return
  }
  func.func @transform_0(%arg0: i32, %arg1: i32) -> (i32, i32) {
    %c0_i32 = arith.constant 0 : i32
    return %arg0, %arg1 : i32, i32
  }
  func.func @transform_1(%arg0: i32, %arg1: i32) -> (i32, i32) {
    %c0_i32 = arith.constant 0 : i32
    %c0_i32_0 = arith.constant 0 : i32
    return %arg1, %c0_i32 : i32, i32
  }
  func.func @transform_2(%arg0: i32, %arg1: i32) -> (i32, i32) {
    %c0_i32 = arith.constant 0 : i32
    %c0_i32_0 = arith.constant 0 : i32
    %c0_i32_1 = arith.constant 0 : i32
    return %c0_i32, %c0_i32_0 : i32, i32
  }
  func.func @transform_3(%arg0: i32, %arg1: i32) -> (i32, i32) {
    %c0_i32 = arith.constant 0 : i32
    %c0_i32_0 = arith.constant 0 : i32
    return %arg0, %c0_i32 : i32, i32
  }
  func.func @transform_4(%arg0: i32, %arg1: i32) -> (i32, i32) {
    %c0_i32 = arith.constant 0 : i32
    %c0_i32_0 = arith.constant 0 : i32
    %c0_i32_1 = arith.constant 0 : i32
    return %c0_i32, %c0_i32_0 : i32, i32
  }
  func.func @transform_5(%arg0: i32, %arg1: i32) -> (i32, i32) {
    %c0_i32 = arith.constant 0 : i32
    %c0_i32_0 = arith.constant 0 : i32
    %c0_i32_1 = arith.constant 0 : i32
    return %c0_i32, %c0_i32_0 : i32, i32
  }
  func.func @transform_6(%arg0: i32, %arg1: i32) -> (i32, i32) {
    %c0_i32 = arith.constant 0 : i32
    %c0_i32_0 = arith.constant 0 : i32
    return %arg0, %c0_i32 : i32, i32
  }
}

module attributes {stable_mosaic.version = 11 : i64} {
  func.func @_attention_kernel(%arg0: i32, %arg1: memref<1x8x32xbf16, #tpu.memory_space<vmem>>, %arg2: memref<1x8x32xbf16, #tpu.memory_space<vmem>>, %arg3: memref<1x8x32xbf16, #tpu.memory_space<vmem>>, %arg4: memref<1x8x32xbf16, #tpu.memory_space<vmem>>) attributes {dimension_semantics = [#tpu.dimension_semantics<parallel>], iteration_bounds = array<i64: 2>, scalar_prefetch = 0 : i64, scratch_operands = 0 : i64, tpu.core_type = #tpu.core_type<tc>, window_params = [{transform_indices = @transform_0, window_bounds = array<i64: 1, 8, 32>}, {transform_indices = @transform_1, window_bounds = array<i64: 1, 8, 32>}, {transform_indices = @transform_2, window_bounds = array<i64: 1, 8, 32>}, {transform_indices = @transform_3, window_bounds = array<i64: 1, 8, 32>}]} {
    %c0 = arith.constant 0 : index
    %c0_0 = arith.constant 0 : index
    %c0_1 = arith.constant 0 : index
    %0 = vector.load %arg1[%c0, %c0_0, %c0_1] : memref<1x8x32xbf16, #tpu.memory_space<vmem>>, vector<1x8x32xbf16>
    %1 = vector.shape_cast %0 : vector<1x8x32xbf16> to vector<8x32xbf16>
    %cst = arith.constant 3.535160e-01 : bf16
    %2 = vector.broadcast %cst : bf16 to vector<8x32xbf16>
    %3 = arith.mulf %1, %2 : vector<8x32xbf16>
    %c0_2 = arith.constant 0 : index
    %c0_3 = arith.constant 0 : index
    %c0_4 = arith.constant 0 : index
    %4 = vector.load %arg2[%c0_2, %c0_3, %c0_4] : memref<1x8x32xbf16, #tpu.memory_space<vmem>>, vector<1x8x32xbf16>
    %5 = vector.shape_cast %4 : vector<1x8x32xbf16> to vector<8x32xbf16>
    %c0_5 = arith.constant 0 : index
    %c0_6 = arith.constant 0 : index
    %c0_7 = arith.constant 0 : index
    %6 = vector.load %arg3[%c0_5, %c0_6, %c0_7] : memref<1x8x32xbf16, #tpu.memory_space<vmem>>, vector<1x8x32xbf16>
    %7 = vector.shape_cast %6 : vector<1x8x32xbf16> to vector<8x32xbf16>
    %8 = tpu.iota {dimensions = array<i32: 0>} : vector<8x8xi32>
    %9 = tpu.iota {dimensions = array<i32: 1>} : vector<8x8xi32>
    %10 = arith.cmpi sge, %8, %9 : vector<8x8xi32>
    %11 = vector.extract_strided_slice %3 {offsets = [0, 0], sizes = [8, 8], strides = [1, 1]} : vector<8x32xbf16> to vector<8x8xbf16>
    %12 = vector.extract_strided_slice %5 {offsets = [0, 0], sizes = [8, 8], strides = [1, 1]} : vector<8x32xbf16> to vector<8x8xbf16>
    %13 = vector.extract_strided_slice %7 {offsets = [0, 0], sizes = [8, 8], strides = [1, 1]} : vector<8x32xbf16> to vector<8x8xbf16>
    %cst_8 = arith.constant dense<0.000000e+00> : vector<8x8xf32>
    %14 = tpu.matmul %11, %12, %cst_8 {dimension_numbers = #tpu.dot_dimension_numbers<[1], [1], [0], [0], [0, 0, 1, 0], [], []>} : vector<8x8xbf16>, vector<8x8xbf16>, vector<8x8xf32> -> vector<8x8xf32>
    %cst_9 = arith.constant -1.000000e+30 : f32
    %15 = vector.broadcast %cst_9 : f32 to vector<8x8xf32>
    %16 = arith.select %10, %14, %15 : vector<8x8xi1>, vector<8x8xf32>
    %cst_10 = arith.constant dense<0xFF800000> : vector<8xf32>
    %17 = vector.multi_reduction <maximumf>, %16, %cst_10 [1] : vector<8x8xf32> to vector<8xf32>
    %18 = vector.shape_cast %17 : vector<8xf32> to vector<8x1xf32>
    %19 = vector.broadcast %18 : vector<8x1xf32> to vector<8x8xf32>
    %20 = arith.subf %16, %19 : vector<8x8xf32>
    %21 = math.exp %20 : vector<8x8xf32>
    %cst_11 = arith.constant dense<0.000000e+00> : vector<8xf32>
    %22 = vector.multi_reduction <add>, %21, %cst_11 [1] : vector<8x8xf32> to vector<8xf32>
    %23 = vector.shape_cast %22 : vector<8xf32> to vector<8x1xf32>
    %24 = tpu.reciprocal %23 {approx = true} : vector<8x1xf32> -> vector<8x1xf32>
    %25 = vector.broadcast %24 : vector<8x1xf32> to vector<8x8xf32>
    %26 = arith.mulf %21, %25 : vector<8x8xf32>
    %27 = arith.truncf %26 : vector<8x8xf32> to vector<8x8xbf16>
    %cst_12 = arith.constant dense<0.000000e+00> : vector<8x8xf32>
    %28 = tpu.matmul %27, %13, %cst_12 {dimension_numbers = #tpu.dot_dimension_numbers<[1], [0], [0], [1], [0, 0, 1, 1], [], []>} : vector<8x8xbf16>, vector<8x8xbf16>, vector<8x8xf32> -> vector<8x8xf32>
    %29 = vector.extract_strided_slice %3 {offsets = [0, 8], sizes = [8, 8], strides = [1, 1]} : vector<8x32xbf16> to vector<8x8xbf16>
    %30 = vector.extract_strided_slice %5 {offsets = [0, 8], sizes = [8, 8], strides = [1, 1]} : vector<8x32xbf16> to vector<8x8xbf16>
    %31 = vector.extract_strided_slice %7 {offsets = [0, 8], sizes = [8, 8], strides = [1, 1]} : vector<8x32xbf16> to vector<8x8xbf16>
    %cst_13 = arith.constant dense<0.000000e+00> : vector<8x8xf32>
    %32 = tpu.matmul %29, %30, %cst_13 {dimension_numbers = #tpu.dot_dimension_numbers<[1], [1], [0], [0], [0, 0, 1, 0], [], []>} : vector<8x8xbf16>, vector<8x8xbf16>, vector<8x8xf32> -> vector<8x8xf32>
    %cst_14 = arith.constant -1.000000e+30 : f32
    %33 = vector.broadcast %cst_14 : f32 to vector<8x8xf32>
    %34 = arith.select %10, %32, %33 : vector<8x8xi1>, vector<8x8xf32>
    %cst_15 = arith.constant dense<0xFF800000> : vector<8xf32>
    %35 = vector.multi_reduction <maximumf>, %34, %cst_15 [1] : vector<8x8xf32> to vector<8xf32>
    %36 = vector.shape_cast %35 : vector<8xf32> to vector<8x1xf32>
    %37 = vector.broadcast %36 : vector<8x1xf32> to vector<8x8xf32>
    %38 = arith.subf %34, %37 : vector<8x8xf32>
    %39 = math.exp %38 : vector<8x8xf32>
    %cst_16 = arith.constant dense<0.000000e+00> : vector<8xf32>
    %40 = vector.multi_reduction <add>, %39, %cst_16 [1] : vector<8x8xf32> to vector<8xf32>
    %41 = vector.shape_cast %40 : vector<8xf32> to vector<8x1xf32>
    %42 = tpu.reciprocal %41 {approx = true} : vector<8x1xf32> -> vector<8x1xf32>
    %43 = vector.broadcast %42 : vector<8x1xf32> to vector<8x8xf32>
    %44 = arith.mulf %39, %43 : vector<8x8xf32>
    %45 = arith.truncf %44 : vector<8x8xf32> to vector<8x8xbf16>
    %cst_17 = arith.constant dense<0.000000e+00> : vector<8x8xf32>
    %46 = tpu.matmul %45, %31, %cst_17 {dimension_numbers = #tpu.dot_dimension_numbers<[1], [0], [0], [1], [0, 0, 1, 1], [], []>} : vector<8x8xbf16>, vector<8x8xbf16>, vector<8x8xf32> -> vector<8x8xf32>
    %47 = vector.extract_strided_slice %3 {offsets = [0, 16], sizes = [8, 8], strides = [1, 1]} : vector<8x32xbf16> to vector<8x8xbf16>
    %48 = vector.extract_strided_slice %5 {offsets = [0, 16], sizes = [8, 8], strides = [1, 1]} : vector<8x32xbf16> to vector<8x8xbf16>
    %49 = vector.extract_strided_slice %7 {offsets = [0, 16], sizes = [8, 8], strides = [1, 1]} : vector<8x32xbf16> to vector<8x8xbf16>
    %cst_18 = arith.constant dense<0.000000e+00> : vector<8x8xf32>
    %50 = tpu.matmul %47, %48, %cst_18 {dimension_numbers = #tpu.dot_dimension_numbers<[1], [1], [0], [0], [0, 0, 1, 0], [], []>} : vector<8x8xbf16>, vector<8x8xbf16>, vector<8x8xf32> -> vector<8x8xf32>
    %cst_19 = arith.constant -1.000000e+30 : f32
    %51 = vector.broadcast %cst_19 : f32 to vector<8x8xf32>
    %52 = arith.select %10, %50, %51 : vector<8x8xi1>, vector<8x8xf32>
    %cst_20 = arith.constant dense<0xFF800000> : vector<8xf32>
    %53 = vector.multi_reduction <maximumf>, %52, %cst_20 [1] : vector<8x8xf32> to vector<8xf32>
    %54 = vector.shape_cast %53 : vector<8xf32> to vector<8x1xf32>
    %55 = vector.broadcast %54 : vector<8x1xf32> to vector<8x8xf32>
    %56 = arith.subf %52, %55 : vector<8x8xf32>
    %57 = math.exp %56 : vector<8x8xf32>
    %cst_21 = arith.constant dense<0.000000e+00> : vector<8xf32>
    %58 = vector.multi_reduction <add>, %57, %cst_21 [1] : vector<8x8xf32> to vector<8xf32>
    %59 = vector.shape_cast %58 : vector<8xf32> to vector<8x1xf32>
    %60 = tpu.reciprocal %59 {approx = true} : vector<8x1xf32> -> vector<8x1xf32>
    %61 = vector.broadcast %60 : vector<8x1xf32> to vector<8x8xf32>
    %62 = arith.mulf %57, %61 : vector<8x8xf32>
    %63 = arith.truncf %62 : vector<8x8xf32> to vector<8x8xbf16>
    %cst_22 = arith.constant dense<0.000000e+00> : vector<8x8xf32>
    %64 = tpu.matmul %63, %49, %cst_22 {dimension_numbers = #tpu.dot_dimension_numbers<[1], [0], [0], [1], [0, 0, 1, 1], [], []>} : vector<8x8xbf16>, vector<8x8xbf16>, vector<8x8xf32> -> vector<8x8xf32>
    %65 = vector.extract_strided_slice %3 {offsets = [0, 24], sizes = [8, 8], strides = [1, 1]} : vector<8x32xbf16> to vector<8x8xbf16>
    %66 = vector.extract_strided_slice %5 {offsets = [0, 24], sizes = [8, 8], strides = [1, 1]} : vector<8x32xbf16> to vector<8x8xbf16>
    %67 = vector.extract_strided_slice %7 {offsets = [0, 24], sizes = [8, 8], strides = [1, 1]} : vector<8x32xbf16> to vector<8x8xbf16>
    %cst_23 = arith.constant dense<0.000000e+00> : vector<8x8xf32>
    %68 = tpu.matmul %65, %66, %cst_23 {dimension_numbers = #tpu.dot_dimension_numbers<[1], [1], [0], [0], [0, 0, 1, 0], [], []>} : vector<8x8xbf16>, vector<8x8xbf16>, vector<8x8xf32> -> vector<8x8xf32>
    %cst_24 = arith.constant -1.000000e+30 : f32
    %69 = vector.broadcast %cst_24 : f32 to vector<8x8xf32>
    %70 = arith.select %10, %68, %69 : vector<8x8xi1>, vector<8x8xf32>
    %cst_25 = arith.constant dense<0xFF800000> : vector<8xf32>
    %71 = vector.multi_reduction <maximumf>, %70, %cst_25 [1] : vector<8x8xf32> to vector<8xf32>
    %72 = vector.shape_cast %71 : vector<8xf32> to vector<8x1xf32>
    %73 = vector.broadcast %72 : vector<8x1xf32> to vector<8x8xf32>
    %74 = arith.subf %70, %73 : vector<8x8xf32>
    %75 = math.exp %74 : vector<8x8xf32>
    %cst_26 = arith.constant dense<0.000000e+00> : vector<8xf32>
    %76 = vector.multi_reduction <add>, %75, %cst_26 [1] : vector<8x8xf32> to vector<8xf32>
    %77 = vector.shape_cast %76 : vector<8xf32> to vector<8x1xf32>
    %78 = tpu.reciprocal %77 {approx = true} : vector<8x1xf32> -> vector<8x1xf32>
    %79 = vector.broadcast %78 : vector<8x1xf32> to vector<8x8xf32>
    %80 = arith.mulf %75, %79 : vector<8x8xf32>
    %81 = arith.truncf %80 : vector<8x8xf32> to vector<8x8xbf16>
    %cst_27 = arith.constant dense<0.000000e+00> : vector<8x8xf32>
    %82 = tpu.matmul %81, %67, %cst_27 {dimension_numbers = #tpu.dot_dimension_numbers<[1], [0], [0], [1], [0, 0, 1, 1], [], []>} : vector<8x8xbf16>, vector<8x8xbf16>, vector<8x8xf32> -> vector<8x8xf32>
    %83 = tpu.concatenate %28, %46, %64, %82 in 1 : vector<8x8xf32>, vector<8x8xf32>, vector<8x8xf32>, vector<8x8xf32> -> vector<8x32xf32>
    %84 = arith.truncf %83 : vector<8x32xf32> to vector<8x32xbf16>
    %c0_28 = arith.constant 0 : index
    %c0_29 = arith.constant 0 : index
    %c0_30 = arith.constant 0 : index
    %85 = vector.load %arg4[%c0_28, %c0_29, %c0_30] : memref<1x8x32xbf16, #tpu.memory_space<vmem>>, vector<1x8x32xbf16>
    %86 = vector.shape_cast %85 : vector<1x8x32xbf16> to vector<8x32xbf16>
    %87 = vector.shape_cast %84 : vector<8x32xbf16> to vector<1x8x32xbf16>
    tpu.vector_store %arg4[%c0_28, %c0_29, %c0_30], %87 {strides = array<i32>} : memref<1x8x32xbf16, #tpu.memory_space<vmem>>, vector<1x8x32xbf16>,
    return
  }
  func.func @transform_0(%arg0: i32) -> (i32, i32, i32) {
    %c0_i32 = arith.constant 0 : i32
    %c0_i32_0 = arith.constant 0 : i32
    %c0_i32_1 = arith.constant 0 : i32
    return %arg0, %c0_i32, %c0_i32_0 : i32, i32, i32
  }
  func.func @transform_1(%arg0: i32) -> (i32, i32, i32) {
    %c0_i32 = arith.constant 0 : i32
    %c0_i32_0 = arith.constant 0 : i32
    %c0_i32_1 = arith.constant 0 : i32
    return %arg0, %c0_i32, %c0_i32_0 : i32, i32, i32
  }
  func.func @transform_2(%arg0: i32) -> (i32, i32, i32) {
    %c0_i32 = arith.constant 0 : i32
    %c0_i32_0 = arith.constant 0 : i32
    %c0_i32_1 = arith.constant 0 : i32
    return %arg0, %c0_i32, %c0_i32_0 : i32, i32, i32
  }
  func.func @transform_3(%arg0: i32) -> (i32, i32, i32) {
    %c0_i32 = arith.constant 0 : i32
    %c0_i32_0 = arith.constant 0 : i32
    %c0_i32_1 = arith.constant 0 : i32
    return %arg0, %c0_i32, %c0_i32_0 : i32, i32, i32
  }
}

module attributes {stable_mosaic.version = 11 : i64} {
  func.func @_linear_kernel(%arg0: i32, %arg1: i32, %arg2: i32, %arg3: memref<16x32xbf16, #tpu.memory_space<vmem>>, %arg4: memref<32x32xbf16, #tpu.memory_space<vmem>>, %arg5: memref<1x32xf32, #tpu.memory_space<vmem>>, %arg6: memref<16x32xbf16, #tpu.memory_space<vmem>>, %arg7: memref<16x32xf32, #tpu.memory_space<vmem>>) attributes {dimension_semantics = [#tpu.dimension_semantics<parallel>, #tpu.dimension_semantics<parallel>, #tpu.dimension_semantics<arbitrary>], iteration_bounds = array<i64: 1, 1, 1>, scalar_prefetch = 0 : i64, scratch_operands = 1 : i64, tpu.core_type = #tpu.core_type<tc>, window_params = [{transform_indices = @transform_0, window_bounds = array<i64: 16, 32>}, {transform_indices = @transform_1, window_bounds = array<i64: 32, 32>}, {transform_indices = @transform_2, window_bounds = array<i64: 1, 32>}, {transform_indices = @transform_3, window_bounds = array<i64: 16, 32>}]} {
    %c0_i32 = arith.constant 0 : i32
    %0 = arith.cmpi eq, %arg2, %c0_i32 : i32
    %1 = arith.extui %0 : i1 to i32
    %c0_i32_0 = arith.constant 0 : i32
    %2 = arith.cmpi ne, %1, %c0_i32_0 : i32
    scf.if %2 {
      %cst_10 = arith.constant 0.000000e+00 : f32
      %12 = vector.broadcast %cst_10 : f32 to vector<16x32xf32>
      %c0_11 = arith.constant 0 : index
      %c0_12 = arith.constant 0 : index
      %13 = vector.load %arg7[%c0_11, %c0_12] : memref<16x32xf32, #tpu.memory_space<vmem>>, vector<16x32xf32>
      tpu.vector_store %arg7[%c0_11, %c0_12], %12 {strides = array<i32>} : memref<16x32xf32, #tpu.memory_space<vmem>>, vector<16x32xf32>,
    } else {
    }
    %c0 = arith.constant 0 : index
    %c0_1 = arith.constant 0 : index
    %3 = vector.load %arg7[%c0, %c0_1] : memref<16x32xf32, #tpu.memory_space<vmem>>, vector<16x32xf32>
    %c0_2 = arith.constant 0 : index
    %c0_3 = arith.constant 0 : index
    %4 = vector.load %arg3[%c0_2, %c0_3] : memref<16x32xbf16, #tpu.memory_space<vmem>>, vector<16x32xbf16>
    %c0_4 = arith.constant 0 : index
    %c0_5 = arith.constant 0 : index
    %5 = vector.load %arg4[%c0_4, %c0_5] : memref<32x32xbf16, #tpu.memory_space<vmem>>, vector<32x32xbf16>
    %cst = arith.constant dense<0.000000e+00> : vector<16x32xf32>
    %6 = tpu.matmul %4, %5, %cst {dimension_numbers = #tpu.dot_dimension_numbers<[1], [0], [0], [1], [0, 0, 1, 1], [], []>} : vector<16x32xbf16>, vector<32x32xbf16>, vector<16x32xf32> -> vector<16x32xf32>
    %7 = arith.addf %3, %6 : vector<16x32xf32>
    %c0_6 = arith.constant 0 : index
    %c0_7 = arith.constant 0 : index
    %8 = vector.load %arg7[%c0_6, %c0_7] : memref<16x32xf32, #tpu.memory_space<vmem>>, vector<16x32xf32>
    tpu.vector_store %arg7[%c0_6, %c0_7], %7 {strides = array<i32>} : memref<16x32xf32, #tpu.memory_space<vmem>>, vector<16x32xf32>,
    %c0_i32_8 = arith.constant 0 : i32
    %9 = arith.cmpi eq, %arg2, %c0_i32_8 : i32
    %10 = arith.extui %9 : i1 to i32
    %c0_i32_9 = arith.constant 0 : i32
    %11 = arith.cmpi ne, %10, %c0_i32_9 : i32
    scf.if %11 {
      %c0_10 = arith.constant 0 : index
      %c0_11 = arith.constant 0 : index
      %12 = vector.load %arg7[%c0_10, %c0_11] : memref<16x32xf32, #tpu.memory_space<vmem>>, vector<16x32xf32>
      %c0_12 = arith.constant 0 : index
      %c0_13 = arith.constant 0 : index
      %13 = vector.load %arg5[%c0_12, %c0_13] : memref<1x32xf32, #tpu.memory_space<vmem>>, vector<1x32xf32>
      %14 = vector.broadcast %13 : vector<1x32xf32> to vector<16x32xf32>
      %15 = arith.addf %12, %14 : vector<16x32xf32>
      %16 = arith.truncf %15 : vector<16x32xf32> to vector<16x32xbf16>
      %c0_14 = arith.constant 0 : index
      %c0_15 = arith.constant 0 : index
      %17 = vector.load %arg6[%c0_14, %c0_15] : memref<16x32xbf16, #tpu.memory_space<vmem>>, vector<16x32xbf16>
      tpu.vector_store %arg6[%c0_14, %c0_15], %16 {strides = array<i32>} : memref<16x32xbf16, #tpu.memory_space<vmem>>, vector<16x32xbf16>,
    } else {
    }
    return
  }
  func.func @transform_0(%arg0: i32, %arg1: i32, %arg2: i32) -> (i32, i32) {
    %c0_i32 = arith.constant 0 : i32
    return %arg0, %arg2 : i32, i32
  }
  func.func @transform_1(%arg0: i32, %arg1: i32, %arg2: i32) -> (i32, i32) {
    %c0_i32 = arith.constant 0 : i32
    return %arg2, %arg1 : i32, i32
  }
  func.func @transform_2(%arg0: i32, %arg1: i32, %arg2: i32) -> (i32, i32) {
    %c0_i32 = arith.constant 0 : i32
    %c0_i32_0 = arith.constant 0 : i32
    return %c0_i32, %arg1 : i32, i32
  }
  func.func @transform_3(%arg0: i32, %arg1: i32, %arg2: i32) -> (i32, i32) {
    %c0_i32 = arith.constant 0 : i32
    return %arg0, %arg1 : i32, i32
  }
}

module attributes {stable_mosaic.version = 11 : i64} {
  func.func @_ffn_kernel(%arg0: i32, %arg1: i32, %arg2: memref<16x32xbf16, #tpu.memory_space<vmem>>, %arg3: memref<32x64xbf16, #tpu.memory_space<vmem>>, %arg4: memref<1x64xf32, #tpu.memory_space<vmem>>, %arg5: memref<64x32xbf16, #tpu.memory_space<vmem>>, %arg6: memref<1x32xf32, #tpu.memory_space<vmem>>, %arg7: memref<16x32xbf16, #tpu.memory_space<vmem>>, %arg8: memref<1x32xf32, #tpu.memory_space<vmem>>, %arg9: memref<1x32xf32, #tpu.memory_space<vmem>>, %arg10: memref<16x32xbf16, #tpu.memory_space<vmem>>, %arg11: memref<16x32xf32, #tpu.memory_space<vmem>>) attributes {dimension_semantics = [#tpu.dimension_semantics<parallel>, #tpu.dimension_semantics<arbitrary>], iteration_bounds = array<i64: 1, 1>, scalar_prefetch = 0 : i64, scratch_operands = 1 : i64, tpu.core_type = #tpu.core_type<tc>, window_params = [{transform_indices = @transform_0, window_bounds = array<i64: 16, 32>}, {transform_indices = @transform_1, window_bounds = array<i64: 32, 64>}, {transform_indices = @transform_2, window_bounds = array<i64: 1, 64>}, {transform_indices = @transform_3, window_bounds = array<i64: 64, 32>}, {pipeline_mode = #tpu.pipeline_mode<synchronous>, transform_indices = @transform_4, window_bounds = array<i64: 1, 32>}, {transform_indices = @transform_5, window_bounds = array<i64: 16, 32>}, {pipeline_mode = #tpu.pipeline_mode<synchronous>, transform_indices = @transform_6, window_bounds = array<i64: 1, 32>}, {pipeline_mode = #tpu.pipeline_mode<synchronous>, transform_indices = @transform_7, window_bounds = array<i64: 1, 32>}, {transform_indices = @transform_8, window_bounds = array<i64: 16, 32>}]} {
    %c0_i32 = arith.constant 0 : i32
    %0 = arith.cmpi eq, %arg1, %c0_i32 : i32
    %1 = arith.extui %0 : i1 to i32
    %c0_i32_0 = arith.constant 0 : i32
    %2 = arith.cmpi ne, %1, %c0_i32_0 : i32
    scf.if %2 {
      %cst_16 = arith.constant 0.000000e+00 : f32
      %20 = vector.broadcast %cst_16 : f32 to vector<16x32xf32>
      %c0_17 = arith.constant 0 : index
      %c0_18 = arith.constant 0 : index
      %21 = vector.load %arg11[%c0_17, %c0_18] : memref<16x32xf32, #tpu.memory_space<vmem>>, vector<16x32xf32>
      tpu.vector_store %arg11[%c0_17, %c0_18], %20 {strides = array<i32>} : memref<16x32xf32, #tpu.memory_space<vmem>>, vector<16x32xf32>,
    } else {
    }
    %c0 = arith.constant 0 : index
    %c0_1 = arith.constant 0 : index
    %3 = vector.load %arg2[%c0, %c0_1] : memref<16x32xbf16, #tpu.memory_space<vmem>>, vector<16x32xbf16>
    %c0_2 = arith.constant 0 : index
    %c0_3 = arith.constant 0 : index
    %4 = vector.load %arg3[%c0_2, %c0_3] : memref<32x64xbf16, #tpu.memory_space<vmem>>, vector<32x64xbf16>
    %cst = arith.constant dense<0.000000e+00> : vector<16x64xf32>
    %5 = tpu.matmul %3, %4, %cst {dimension_numbers = #tpu.dot_dimension_numbers<[1], [0], [0], [1], [0, 0, 1, 1], [], []>} : vector<16x32xbf16>, vector<32x64xbf16>, vector<16x64xf32> -> vector<16x64xf32>
    %c0_4 = arith.constant 0 : index
    %c0_5 = arith.constant 0 : index
    %6 = vector.load %arg4[%c0_4, %c0_5] : memref<1x64xf32, #tpu.memory_space<vmem>>, vector<1x64xf32>
    %7 = vector.broadcast %6 : vector<1x64xf32> to vector<16x64xf32>
    %8 = arith.addf %5, %7 : vector<16x64xf32>
    %cst_6 = arith.constant 0.000000e+00 : f32
    %9 = vector.broadcast %cst_6 : f32 to vector<16x64xf32>
    %10 = arith.maximumf %8, %9 : vector<16x64xf32>
    %c0_7 = arith.constant 0 : index
    %c0_8 = arith.constant 0 : index
    %11 = vector.load %arg11[%c0_7, %c0_8] : memref<16x32xf32, #tpu.memory_space<vmem>>, vector<16x32xf32>
    %12 = arith.truncf %10 : vector<16x64xf32> to vector<16x64xbf16>
    %c0_9 = arith.constant 0 : index
    %c0_10 = arith.constant 0 : index
    %13 = vector.load %arg5[%c0_9, %c0_10] : memref<64x32xbf16, #tpu.memory_space<vmem>>, vector<64x32xbf16>
    %cst_11 = arith.constant dense<0.000000e+00> : vector<16x32xf32>
    %14 = tpu.matmul %12, %13, %cst_11 {dimension_numbers = #tpu.dot_dimension_numbers<[1], [0], [0], [1], [0, 0, 1, 1], [], []>} : vector<16x64xbf16>, vector<64x32xbf16>, vector<16x32xf32> -> vector<16x32xf32>
    %15 = arith.addf %11, %14 : vector<16x32xf32>
    %c0_12 = arith.constant 0 : index
    %c0_13 = arith.constant 0 : index
    %16 = vector.load %arg11[%c0_12, %c0_13] : memref<16x32xf32, #tpu.memory_space<vmem>>, vector<16x32xf32>
    tpu.vector_store %arg11[%c0_12, %c0_13], %15 {strides = array<i32>} : memref<16x32xf32, #tpu.memory_space<vmem>>, vector<16x32xf32>,
    %c0_i32_14 = arith.constant 0 : i32
    %17 = arith.cmpi eq, %arg1, %c0_i32_14 : i32
    %18 = arith.extui %17 : i1 to i32
    %c0_i32_15 = arith.constant 0 : i32
    %19 = arith.cmpi ne, %18, %c0_i32_15 : i32
    scf.if %19 {
      %c0_16 = arith.constant 0 : index
      %c0_17 = arith.constant 0 : index
      %20 = vector.load %arg11[%c0_16, %c0_17] : memref<16x32xf32, #tpu.memory_space<vmem>>, vector<16x32xf32>
      %c0_18 = arith.constant 0 : index
      %c0_19 = arith.constant 0 : index
      %21 = vector.load %arg6[%c0_18, %c0_19] : memref<1x32xf32, #tpu.memory_space<vmem>>, vector<1x32xf32>
      %22 = vector.broadcast %21 : vector<1x32xf32> to vector<16x32xf32>
      %23 = arith.addf %20, %22 : vector<16x32xf32>
      %c0_20 = arith.constant 0 : index
      %c0_21 = arith.constant 0 : index
      %24 = vector.load %arg7[%c0_20, %c0_21] : memref<16x32xbf16, #tpu.memory_space<vmem>>, vector<16x32xbf16>
      %25 = arith.extf %24 : vector<16x32xbf16> to vector<16x32xf32>
      %26 = arith.addf %23, %25 : vector<16x32xf32>
      %cst_22 = arith.constant dense<0.000000e+00> : vector<16xf32>
      %27 = vector.multi_reduction <add>, %26, %cst_22 [1] : vector<16x32xf32> to vector<16xf32>
      %28 = vector.shape_cast %27 : vector<16xf32> to vector<16x1xf32>
      %cst_23 = arith.constant 3.200000e+01 : f32
      %29 = vector.broadcast %cst_23 : f32 to vector<16x1xf32>
      %30 = arith.divf %28, %29 : vector<16x1xf32>
      %31 = vector.broadcast %30 : vector<16x1xf32> to vector<16x32xf32>
      %32 = arith.subf %26, %31 : vector<16x32xf32>
      %33 = arith.mulf %32, %32 : vector<16x32xf32>
      %cst_24 = arith.constant dense<0.000000e+00> : vector<16xf32>
      %34 = vector.multi_reduction <add>, %33, %cst_24 [1] : vector<16x32xf32> to vector<16xf32>
      %35 = vector.shape_cast %34 : vector<16xf32> to vector<16x1xf32>
      %cst_25 = arith.constant 3.200000e+01 : f32
      %36 = vector.broadcast %cst_25 : f32 to vector<16x1xf32>
      %37 = arith.divf %35, %36 : vector<16x1xf32>
      %cst_26 = arith.constant 9.99999974E-6 : f32
      %38 = vector.broadcast %cst_26 : f32 to vector<16x1xf32>
      %39 = arith.addf %37, %38 : vector<16x1xf32>
      %40 = math.rsqrt %39 : vector<16x1xf32>
      %41 = vector.broadcast %40 : vector<16x1xf32> to vector<16x32xf32>
      %42 = arith.mulf %32, %41 : vector<16x32xf32>
      %c0_27 = arith.constant 0 : index
      %c0_28 = arith.constant 0 : index
      %43 = vector.load %arg8[%c0_27, %c0_28] : memref<1x32xf32, #tpu.memory_space<vmem>>, vector<1x32xf32>
      %44 = vector.broadcast %43 : vector<1x32xf32> to vector<16x32xf32>
      %45 = arith.mulf %42, %44 : vector<16x32xf32>
      %c0_29 = arith.constant 0 : index
      %c0_30 = arith.constant 0 : index
      %46 = vector.load %arg9[%c0_29, %c0_30] : memref<1x32xf32, #tpu.memory_space<vmem>>, vector<1x32xf32>
      %47 = vector.broadcast %46 : vector<1x32xf32> to vector<16x32xf32>
      %48 = arith.addf %45, %47 : vector<16x32xf32>
      %49 = arith.truncf %48 : vector<16x32xf32> to vector<16x32xbf16>
      %c0_31 = arith.constant 0 : index
      %c0_32 = arith.constant 0 : index
      %50 = vector.load %arg10[%c0_31, %c0_32] : memref<16x32xbf16, #tpu.memory_space<vmem>>, vector<16x32xbf16>
      tpu.vector_store %arg10[%c0_31, %c0_32], %49 {strides = array<i32>} : memref<16x32xbf16, #tpu.memory_space<vmem>>, vector<16x32xbf16>,
    } else {
    }
    return
  }
  func.func @transform_0(%arg0: i32, %arg1: i32) -> (i32, i32) {
    %c0_i32 = arith.constant 0 : i32
    %c0_i32_0 = arith.constant 0 : i32
    return %arg0, %c0_i32 : i32, i32
  }
  func.func @transform_1(%arg0: i32, %arg1: i32) -> (i32, i32) {
    %c0_i32 = arith.constant 0 : i32
    %c0_i32_0 = arith.constant 0 : i32
    return %c0_i32, %arg1 : i32, i32
  }
  func.func @transform_2(%arg0: i32, %arg1: i32) -> (i32, i32) {
    %c0_i32 = arith.constant 0 : i32
    %c0_i32_0 = arith.constant 0 : i32
    return %c0_i32, %arg1 : i32, i32
  }
  func.func @transform_3(%arg0: i32, %arg1: i32) -> (i32, i32) {
    %c0_i32 = arith.constant 0 : i32
    %c0_i32_0 = arith.constant 0 : i32
    return %arg1, %c0_i32 : i32, i32
  }
  func.func @transform_4(%arg0: i32, %arg1: i32) -> (i32, i32) {
    %c0_i32 = arith.constant 0 : i32
    %c0_i32_0 = arith.constant 0 : i32
    %c0_i32_1 = arith.constant 0 : i32
    return %c0_i32, %c0_i32_0 : i32, i32
  }
  func.func @transform_5(%arg0: i32, %arg1: i32) -> (i32, i32) {
    %c0_i32 = arith.constant 0 : i32
    %c0_i32_0 = arith.constant 0 : i32
    return %arg0, %c0_i32 : i32, i32
  }
  func.func @transform_6(%arg0: i32, %arg1: i32) -> (i32, i32) {
    %c0_i32 = arith.constant 0 : i32
    %c0_i32_0 = arith.constant 0 : i32
    %c0_i32_1 = arith.constant 0 : i32
    return %c0_i32, %c0_i32_0 : i32, i32
  }
  func.func @transform_7(%arg0: i32, %arg1: i32) -> (i32, i32) {
    %c0_i32 = arith.constant 0 : i32
    %c0_i32_0 = arith.constant 0 : i32
    %c0_i32_1 = arith.constant 0 : i32
    return %c0_i32, %c0_i32_0 : i32, i32
  }
  func.func @transform_8(%arg0: i32, %arg1: i32) -> (i32, i32) {
    %c0_i32 = arith.constant 0 : i32
    %c0_i32_0 = arith.constant 0 : i32
    return %arg0, %c0_i32 : i32, i32
  }
}

module attributes {stable_mosaic.version = 11 : i64} {
  func.func @_attention_kernel(%arg0: i32, %arg1: memref<1x8x32xbf16, #tpu.memory_space<vmem>>, %arg2: memref<1x8x32xbf16, #tpu.memory_space<vmem>>, %arg3: memref<1x8x32xbf16, #tpu.memory_space<vmem>>, %arg4: memref<1x8x32xbf16, #tpu.memory_space<vmem>>) attributes {dimension_semantics = [#tpu.dimension_semantics<parallel>], iteration_bounds = array<i64: 2>, scalar_prefetch = 0 : i64, scratch_operands = 0 : i64, tpu.core_type = #tpu.core_type<tc>, window_params = [{transform_indices = @transform_0, window_bounds = array<i64: 1, 8, 32>}, {transform_indices = @transform_1, window_bounds = array<i64: 1, 8, 32>}, {transform_indices = @transform_2, window_bounds = array<i64: 1, 8, 32>}, {transform_indices = @transform_3, window_bounds = array<i64: 1, 8, 32>}]} {
    %c0 = arith.constant 0 : index
    %c0_0 = arith.constant 0 : index
    %c0_1 = arith.constant 0 : index
    %0 = vector.load %arg1[%c0, %c0_0, %c0_1] : memref<1x8x32xbf16, #tpu.memory_space<vmem>>, vector<1x8x32xbf16>
    %1 = vector.shape_cast %0 : vector<1x8x32xbf16> to vector<8x32xbf16>
    %cst = arith.constant 3.535160e-01 : bf16
    %2 = vector.broadcast %cst : bf16 to vector<8x32xbf16>
    %3 = arith.mulf %1, %2 : vector<8x32xbf16>
    %c0_2 = arith.constant 0 : index
    %c0_3 = arith.constant 0 : index
    %c0_4 = arith.constant 0 : index
    %4 = vector.load %arg2[%c0_2, %c0_3, %c0_4] : memref<1x8x32xbf16, #tpu.memory_space<vmem>>, vector<1x8x32xbf16>
    %5 = vector.shape_cast %4 : vector<1x8x32xbf16> to vector<8x32xbf16>
    %c0_5 = arith.constant 0 : index
    %c0_6 = arith.constant 0 : index
    %c0_7 = arith.constant 0 : index
    %6 = vector.load %arg3[%c0_5, %c0_6, %c0_7] : memref<1x8x32xbf16, #tpu.memory_space<vmem>>, vector<1x8x32xbf16>
    %7 = vector.shape_cast %6 : vector<1x8x32xbf16> to vector<8x32xbf16>
    %8 = vector.extract_strided_slice %3 {offsets = [0, 0], sizes = [8, 8], strides = [1, 1]} : vector<8x32xbf16> to vector<8x8xbf16>
    %9 = vector.extract_strided_slice %5 {offsets = [0, 0], sizes = [8, 8], strides = [1, 1]} : vector<8x32xbf16> to vector<8x8xbf16>
    %10 = vector.extract_strided_slice %7 {offsets = [0, 0], sizes = [8, 8], strides = [1, 1]} : vector<8x32xbf16> to vector<8x8xbf16>
    %cst_8 = arith.constant dense<0.000000e+00> : vector<8x8xf32>
    %11 = tpu.matmul %8, %9, %cst_8 {dimension_numbers = #tpu.dot_dimension_numbers<[1], [1], [0], [0], [0, 0, 1, 0], [], []>} : vector<8x8xbf16>, vector<8x8xbf16>, vector<8x8xf32> -> vector<8x8xf32>
    %cst_9 = arith.constant dense<0xFF800000> : vector<8xf32>
    %12 = vector.multi_reduction <maximumf>, %11, %cst_9 [1] : vector<8x8xf32> to vector<8xf32>
    %13 = vector.shape_cast %12 : vector<8xf32> to vector<8x1xf32>
    %14 = vector.broadcast %13 : vector<8x1xf32> to vector<8x8xf32>
    %15 = arith.subf %11, %14 : vector<8x8xf32>
    %16 = math.exp %15 : vector<8x8xf32>
    %cst_10 = arith.constant dense<0.000000e+00> : vector<8xf32>
    %17 = vector.multi_reduction <add>, %16, %cst_10 [1] : vector<8x8xf32> to vector<8xf32>
    %18 = vector.shape_cast %17 : vector<8xf32> to vector<8x1xf32>
    %19 = tpu.reciprocal %18 {approx = true} : vector<8x1xf32> -> vector<8x1xf32>
    %20 = vector.broadcast %19 : vector<8x1xf32> to vector<8x8xf32>
    %21 = arith.mulf %16, %20 : vector<8x8xf32>
    %22 = arith.truncf %21 : vector<8x8xf32> to vector<8x8xbf16>
    %cst_11 = arith.constant dense<0.000000e+00> : vector<8x8xf32>
    %23 = tpu.matmul %22, %10, %cst_11 {dimension_numbers = #tpu.dot_dimension_numbers<[1], [0], [0], [1], [0, 0, 1, 1], [], []>} : vector<8x8xbf16>, vector<8x8xbf16>, vector<8x8xf32> -> vector<8x8xf32>
    %24 = vector.extract_strided_slice %3 {offsets = [0, 8], sizes = [8, 8], strides = [1, 1]} : vector<8x32xbf16> to vector<8x8xbf16>
    %25 = vector.extract_strided_slice %5 {offsets = [0, 8], sizes = [8, 8], strides = [1, 1]} : vector<8x32xbf16> to vector<8x8xbf16>
    %26 = vector.extract_strided_slice %7 {offsets = [0, 8], sizes = [8, 8], strides = [1, 1]} : vector<8x32xbf16> to vector<8x8xbf16>
    %cst_12 = arith.constant dense<0.000000e+00> : vector<8x8xf32>
    %27 = tpu.matmul %24, %25, %cst_12 {dimension_numbers = #tpu.dot_dimension_numbers<[1], [1], [0], [0], [0, 0, 1, 0], [], []>} : vector<8x8xbf16>, vector<8x8xbf16>, vector<8x8xf32> -> vector<8x8xf32>
    %cst_13 = arith.constant dense<0xFF800000> : vector<8xf32>
    %28 = vector.multi_reduction <maximumf>, %27, %cst_13 [1] : vector<8x8xf32> to vector<8xf32>
    %29 = vector.shape_cast %28 : vector<8xf32> to vector<8x1xf32>
    %30 = vector.broadcast %29 : vector<8x1xf32> to vector<8x8xf32>
    %31 = arith.subf %27, %30 : vector<8x8xf32>
    %32 = math.exp %31 : vector<8x8xf32>
    %cst_14 = arith.constant dense<0.000000e+00> : vector<8xf32>
    %33 = vector.multi_reduction <add>, %32, %cst_14 [1] : vector<8x8xf32> to vector<8xf32>
    %34 = vector.shape_cast %33 : vector<8xf32> to vector<8x1xf32>
    %35 = tpu.reciprocal %34 {approx = true} : vector<8x1xf32> -> vector<8x1xf32>
    %36 = vector.broadcast %35 : vector<8x1xf32> to vector<8x8xf32>
    %37 = arith.mulf %32, %36 : vector<8x8xf32>
    %38 = arith.truncf %37 : vector<8x8xf32> to vector<8x8xbf16>
    %cst_15 = arith.constant dense<0.000000e+00> : vector<8x8xf32>
    %39 = tpu.matmul %38, %26, %cst_15 {dimension_numbers = #tpu.dot_dimension_numbers<[1], [0], [0], [1], [0, 0, 1, 1], [], []>} : vector<8x8xbf16>, vector<8x8xbf16>, vector<8x8xf32> -> vector<8x8xf32>
    %40 = vector.extract_strided_slice %3 {offsets = [0, 16], sizes = [8, 8], strides = [1, 1]} : vector<8x32xbf16> to vector<8x8xbf16>
    %41 = vector.extract_strided_slice %5 {offsets = [0, 16], sizes = [8, 8], strides = [1, 1]} : vector<8x32xbf16> to vector<8x8xbf16>
    %42 = vector.extract_strided_slice %7 {offsets = [0, 16], sizes = [8, 8], strides = [1, 1]} : vector<8x32xbf16> to vector<8x8xbf16>
    %cst_16 = arith.constant dense<0.000000e+00> : vector<8x8xf32>
    %43 = tpu.matmul %40, %41, %cst_16 {dimension_numbers = #tpu.dot_dimension_numbers<[1], [1], [0], [0], [0, 0, 1, 0], [], []>} : vector<8x8xbf16>, vector<8x8xbf16>, vector<8x8xf32> -> vector<8x8xf32>
    %cst_17 = arith.constant dense<0xFF800000> : vector<8xf32>
    %44 = vector.multi_reduction <maximumf>, %43, %cst_17 [1] : vector<8x8xf32> to vector<8xf32>
    %45 = vector.shape_cast %44 : vector<8xf32> to vector<8x1xf32>
    %46 = vector.broadcast %45 : vector<8x1xf32> to vector<8x8xf32>
    %47 = arith.subf %43, %46 : vector<8x8xf32>
    %48 = math.exp %47 : vector<8x8xf32>
    %cst_18 = arith.constant dense<0.000000e+00> : vector<8xf32>
    %49 = vector.multi_reduction <add>, %48, %cst_18 [1] : vector<8x8xf32> to vector<8xf32>
    %50 = vector.shape_cast %49 : vector<8xf32> to vector<8x1xf32>
    %51 = tpu.reciprocal %50 {approx = true} : vector<8x1xf32> -> vector<8x1xf32>
    %52 = vector.broadcast %51 : vector<8x1xf32> to vector<8x8xf32>
    %53 = arith.mulf %48, %52 : vector<8x8xf32>
    %54 = arith.truncf %53 : vector<8x8xf32> to vector<8x8xbf16>
    %cst_19 = arith.constant dense<0.000000e+00> : vector<8x8xf32>
    %55 = tpu.matmul %54, %42, %cst_19 {dimension_numbers = #tpu.dot_dimension_numbers<[1], [0], [0], [1], [0, 0, 1, 1], [], []>} : vector<8x8xbf16>, vector<8x8xbf16>, vector<8x8xf32> -> vector<8x8xf32>
    %56 = vector.extract_strided_slice %3 {offsets = [0, 24], sizes = [8, 8], strides = [1, 1]} : vector<8x32xbf16> to vector<8x8xbf16>
    %57 = vector.extract_strided_slice %5 {offsets = [0, 24], sizes = [8, 8], strides = [1, 1]} : vector<8x32xbf16> to vector<8x8xbf16>
    %58 = vector.extract_strided_slice %7 {offsets = [0, 24], sizes = [8, 8], strides = [1, 1]} : vector<8x32xbf16> to vector<8x8xbf16>
    %cst_20 = arith.constant dense<0.000000e+00> : vector<8x8xf32>
    %59 = tpu.matmul %56, %57, %cst_20 {dimension_numbers = #tpu.dot_dimension_numbers<[1], [1], [0], [0], [0, 0, 1, 0], [], []>} : vector<8x8xbf16>, vector<8x8xbf16>, vector<8x8xf32> -> vector<8x8xf32>
    %cst_21 = arith.constant dense<0xFF800000> : vector<8xf32>
    %60 = vector.multi_reduction <maximumf>, %59, %cst_21 [1] : vector<8x8xf32> to vector<8xf32>
    %61 = vector.shape_cast %60 : vector<8xf32> to vector<8x1xf32>
    %62 = vector.broadcast %61 : vector<8x1xf32> to vector<8x8xf32>
    %63 = arith.subf %59, %62 : vector<8x8xf32>
    %64 = math.exp %63 : vector<8x8xf32>
    %cst_22 = arith.constant dense<0.000000e+00> : vector<8xf32>
    %65 = vector.multi_reduction <add>, %64, %cst_22 [1] : vector<8x8xf32> to vector<8xf32>
    %66 = vector.shape_cast %65 : vector<8xf32> to vector<8x1xf32>
    %67 = tpu.reciprocal %66 {approx = true} : vector<8x1xf32> -> vector<8x1xf32>
    %68 = vector.broadcast %67 : vector<8x1xf32> to vector<8x8xf32>
    %69 = arith.mulf %64, %68 : vector<8x8xf32>
    %70 = arith.truncf %69 : vector<8x8xf32> to vector<8x8xbf16>
    %cst_23 = arith.constant dense<0.000000e+00> : vector<8x8xf32>
    %71 = tpu.matmul %70, %58, %cst_23 {dimension_numbers = #tpu.dot_dimension_numbers<[1], [0], [0], [1], [0, 0, 1, 1], [], []>} : vector<8x8xbf16>, vector<8x8xbf16>, vector<8x8xf32> -> vector<8x8xf32>
    %72 = tpu.concatenate %23, %39, %55, %71 in 1 : vector<8x8xf32>, vector<8x8xf32>, vector<8x8xf32>, vector<8x8xf32> -> vector<8x32xf32>
    %73 = arith.truncf %72 : vector<8x32xf32> to vector<8x32xbf16>
    %c0_24 = arith.constant 0 : index
    %c0_25 = arith.constant 0 : index
    %c0_26 = arith.constant 0 : index
    %74 = vector.load %arg4[%c0_24, %c0_25, %c0_26] : memref<1x8x32xbf16, #tpu.memory_space<vmem>>, vector<1x8x32xbf16>
    %75 = vector.shape_cast %74 : vector<1x8x32xbf16> to vector<8x32xbf16>
    %76 = vector.shape_cast %73 : vector<8x32xbf16> to vector<1x8x32xbf16>
    tpu.vector_store %arg4[%c0_24, %c0_25, %c0_26], %76 {strides = array<i32>} : memref<1x8x32xbf16, #tpu.memory_space<vmem>>, vector<1x8x32xbf16>,
    return
  }
  func.func @transform_0(%arg0: i32) -> (i32, i32, i32) {
    %c0_i32 = arith.constant 0 : i32
    %c0_i32_0 = arith.constant 0 : i32
    %c0_i32_1 = arith.constant 0 : i32
    return %arg0, %c0_i32, %c0_i32_0 : i32, i32, i32
  }
  func.func @transform_1(%arg0: i32) -> (i32, i32, i32) {
    %c0_i32 = arith.constant 0 : i32
    %c0_i32_0 = arith.constant 0 : i32
    %c0_i32_1 = arith.constant 0 : i32
    return %arg0, %c0_i32, %c0_i32_0 : i32, i32, i32
  }
  func.func @transform_2(%arg0: i32) -> (i32, i32, i32) {
    %c0_i32 = arith.constant 0 : i32
    %c0_i32_0 = arith.constant 0 : i32
    %c0_i32_1 = arith.constant 0 : i32
    return %arg0, %c0_i32, %c0_i32_0 : i32, i32, i32
  }
  func.func @transform_3(%arg0: i32) -> (i32, i32, i32) {
    %c0_i32 = arith.constant 0 : i32
    %c0_i32_0 = arith.constant 0 : i32
    %c0_i32_1 = arith.constant 0 : i32
    return %arg0, %c0_i32, %c0_i32_0 : i32, i32, i32
  }
}

module attributes {stable_mosaic.version = 11 : i64} {
  func.func @_linear_kernel(%arg0: i32, %arg1: i32, %arg2: i32, %arg3: memref<16x32xbf16, #tpu.memory_space<vmem>>, %arg4: memref<32x64xbf16, #tpu.memory_space<vmem>>, %arg5: memref<1x64xf32, #tpu.memory_space<vmem>>, %arg6: memref<16x64xbf16, #tpu.memory_space<vmem>>, %arg7: memref<16x64xf32, #tpu.memory_space<vmem>>) attributes {dimension_semantics = [#tpu.dimension_semantics<parallel>, #tpu.dimension_semantics<parallel>, #tpu.dimension_semantics<arbitrary>], iteration_bounds = array<i64: 1, 1, 1>, scalar_prefetch = 0 : i64, scratch_operands = 1 : i64, tpu.core_type = #tpu.core_type<tc>, window_params = [{transform_indices = @transform_0, window_bounds = array<i64: 16, 32>}, {transform_indices = @transform_1, window_bounds = array<i64: 32, 64>}, {transform_indices = @transform_2, window_bounds = array<i64: 1, 64>}, {transform_indices = @transform_3, window_bounds = array<i64: 16, 64>}]} {
    %c0_i32 = arith.constant 0 : i32
    %0 = arith.cmpi eq, %arg2, %c0_i32 : i32
    %1 = arith.extui %0 : i1 to i32
    %c0_i32_0 = arith.constant 0 : i32
    %2 = arith.cmpi ne, %1, %c0_i32_0 : i32
    scf.if %2 {
      %cst_10 = arith.constant 0.000000e+00 : f32
      %12 = vector.broadcast %cst_10 : f32 to vector<16x64xf32>
      %c0_11 = arith.constant 0 : index
      %c0_12 = arith.constant 0 : index
      %13 = vector.load %arg7[%c0_11, %c0_12] : memref<16x64xf32, #tpu.memory_space<vmem>>, vector<16x64xf32>
      tpu.vector_store %arg7[%c0_11, %c0_12], %12 {strides = array<i32>} : memref<16x64xf32, #tpu.memory_space<vmem>>, vector<16x64xf32>,
    } else {
    }
    %c0 = arith.constant 0 : index
    %c0_1 = arith.constant 0 : index
    %3 = vector.load %arg7[%c0, %c0_1] : memref<16x64xf32, #tpu.memory_space<vmem>>, vector<16x64xf32>
    %c0_2 = arith.constant 0 : index
    %c0_3 = arith.constant 0 : index
    %4 = vector.load %arg3[%c0_2, %c0_3] : memref<16x32xbf16, #tpu.memory_space<vmem>>, vector<16x32xbf16>
    %c0_4 = arith.constant 0 : index
    %c0_5 = arith.constant 0 : index
    %5 = vector.load %arg4[%c0_4, %c0_5] : memref<32x64xbf16, #tpu.memory_space<vmem>>, vector<32x64xbf16>
    %cst = arith.constant dense<0.000000e+00> : vector<16x64xf32>
    %6 = tpu.matmul %4, %5, %cst {dimension_numbers = #tpu.dot_dimension_numbers<[1], [0], [0], [1], [0, 0, 1, 1], [], []>} : vector<16x32xbf16>, vector<32x64xbf16>, vector<16x64xf32> -> vector<16x64xf32>
    %7 = arith.addf %3, %6 : vector<16x64xf32>
    %c0_6 = arith.constant 0 : index
    %c0_7 = arith.constant 0 : index
    %8 = vector.load %arg7[%c0_6, %c0_7] : memref<16x64xf32, #tpu.memory_space<vmem>>, vector<16x64xf32>
    tpu.vector_store %arg7[%c0_6, %c0_7], %7 {strides = array<i32>} : memref<16x64xf32, #tpu.memory_space<vmem>>, vector<16x64xf32>,
    %c0_i32_8 = arith.constant 0 : i32
    %9 = arith.cmpi eq, %arg2, %c0_i32_8 : i32
    %10 = arith.extui %9 : i1 to i32
    %c0_i32_9 = arith.constant 0 : i32
    %11 = arith.cmpi ne, %10, %c0_i32_9 : i32
    scf.if %11 {
      %c0_10 = arith.constant 0 : index
      %c0_11 = arith.constant 0 : index
      %12 = vector.load %arg7[%c0_10, %c0_11] : memref<16x64xf32, #tpu.memory_space<vmem>>, vector<16x64xf32>
      %c0_12 = arith.constant 0 : index
      %c0_13 = arith.constant 0 : index
      %13 = vector.load %arg5[%c0_12, %c0_13] : memref<1x64xf32, #tpu.memory_space<vmem>>, vector<1x64xf32>
      %14 = vector.broadcast %13 : vector<1x64xf32> to vector<16x64xf32>
      %15 = arith.addf %12, %14 : vector<16x64xf32>
      %16 = arith.truncf %15 : vector<16x64xf32> to vector<16x64xbf16>
      %c0_14 = arith.constant 0 : index
      %c0_15 = arith.constant 0 : index
      %17 = vector.load %arg6[%c0_14, %c0_15] : memref<16x64xbf16, #tpu.memory_space<vmem>>, vector<16x64xbf16>
      tpu.vector_store %arg6[%c0_14, %c0_15], %16 {strides = array<i32>} : memref<16x64xbf16, #tpu.memory_space<vmem>>, vector<16x64xbf16>,
    } else {
    }
    return
  }
  func.func @transform_0(%arg0: i32, %arg1: i32, %arg2: i32) -> (i32, i32) {
    %c0_i32 = arith.constant 0 : i32
    return %arg0, %arg2 : i32, i32
  }
  func.func @transform_1(%arg0: i32, %arg1: i32, %arg2: i32) -> (i32, i32) {
    %c0_i32 = arith.constant 0 : i32
    return %arg2, %arg1 : i32, i32
  }
  func.func @transform_2(%arg0: i32, %arg1: i32, %arg2: i32) -> (i32, i32) {
    %c0_i32 = arith.constant 0 : i32
    %c0_i32_0 = arith.constant 0 : i32
    return %c0_i32, %arg1 : i32, i32
  }
  func.func @transform_3(%arg0: i32, %arg1: i32, %arg2: i32) -> (i32, i32) {
    %c0_i32 = arith.constant 0 : i32
    return %arg0, %arg1 : i32, i32
  }
}

module attributes {stable_mosaic.version = 11 : i64} {
  func.func @_linear_kernel(%arg0: i32, %arg1: i32, %arg2: i32, %arg3: memref<16x32xbf16, #tpu.memory_space<vmem>>, %arg4: memref<32x20xbf16, #tpu.memory_space<vmem>>, %arg5: memref<1x20xf32, #tpu.memory_space<vmem>>, %arg6: memref<16x20xf32, #tpu.memory_space<vmem>>, %arg7: memref<16x20xf32, #tpu.memory_space<vmem>>) attributes {dimension_semantics = [#tpu.dimension_semantics<parallel>, #tpu.dimension_semantics<parallel>, #tpu.dimension_semantics<arbitrary>], iteration_bounds = array<i64: 1, 1, 1>, scalar_prefetch = 0 : i64, scratch_operands = 1 : i64, tpu.core_type = #tpu.core_type<tc>, window_params = [{transform_indices = @transform_0, window_bounds = array<i64: 16, 32>}, {transform_indices = @transform_1, window_bounds = array<i64: 32, 20>}, {transform_indices = @transform_2, window_bounds = array<i64: 1, 20>}, {transform_indices = @transform_3, window_bounds = array<i64: 16, 20>}]} {
    %c0_i32 = arith.constant 0 : i32
    %0 = arith.cmpi eq, %arg2, %c0_i32 : i32
    %1 = arith.extui %0 : i1 to i32
    %c0_i32_0 = arith.constant 0 : i32
    %2 = arith.cmpi ne, %1, %c0_i32_0 : i32
    scf.if %2 {
      %cst_10 = arith.constant 0.000000e+00 : f32
      %12 = vector.broadcast %cst_10 : f32 to vector<16x20xf32>
      %c0_11 = arith.constant 0 : index
      %c0_12 = arith.constant 0 : index
      %13 = vector.load %arg7[%c0_11, %c0_12] : memref<16x20xf32, #tpu.memory_space<vmem>>, vector<16x20xf32>
      tpu.vector_store %arg7[%c0_11, %c0_12], %12 {strides = array<i32>} : memref<16x20xf32, #tpu.memory_space<vmem>>, vector<16x20xf32>,
    } else {
    }
    %c0 = arith.constant 0 : index
    %c0_1 = arith.constant 0 : index
    %3 = vector.load %arg7[%c0, %c0_1] : memref<16x20xf32, #tpu.memory_space<vmem>>, vector<16x20xf32>
    %c0_2 = arith.constant 0 : index
    %c0_3 = arith.constant 0 : index
    %4 = vector.load %arg3[%c0_2, %c0_3] : memref<16x32xbf16, #tpu.memory_space<vmem>>, vector<16x32xbf16>
    %c0_4 = arith.constant 0 : index
    %c0_5 = arith.constant 0 : index
    %5 = vector.load %arg4[%c0_4, %c0_5] : memref<32x20xbf16, #tpu.memory_space<vmem>>, vector<32x20xbf16>
    %cst = arith.constant dense<0.000000e+00> : vector<16x20xf32>
    %6 = tpu.matmul %4, %5, %cst {dimension_numbers = #tpu.dot_dimension_numbers<[1], [0], [0], [1], [0, 0, 1, 1], [], []>} : vector<16x32xbf16>, vector<32x20xbf16>, vector<16x20xf32> -> vector<16x20xf32>
    %7 = arith.addf %3, %6 : vector<16x20xf32>
    %c0_6 = arith.constant 0 : index
    %c0_7 = arith.constant 0 : index
    %8 = vector.load %arg7[%c0_6, %c0_7] : memref<16x20xf32, #tpu.memory_space<vmem>>, vector<16x20xf32>
    tpu.vector_store %arg7[%c0_6, %c0_7], %7 {strides = array<i32>} : memref<16x20xf32, #tpu.memory_space<vmem>>, vector<16x20xf32>,
    %c0_i32_8 = arith.constant 0 : i32
    %9 = arith.cmpi eq, %arg2, %c0_i32_8 : i32
    %10 = arith.extui %9 : i1 to i32
    %c0_i32_9 = arith.constant 0 : i32
    %11 = arith.cmpi ne, %10, %c0_i32_9 : i32
    scf.if %11 {
      %c0_10 = arith.constant 0 : index
      %c0_11 = arith.constant 0 : index
      %12 = vector.load %arg7[%c0_10, %c0_11] : memref<16x20xf32, #tpu.memory_space<vmem>>, vector<16x20xf32>
      %c0_12 = arith.constant 0 : index
      %c0_13 = arith.constant 0 : index
      %13 = vector.load %arg5[%c0_12, %c0_13] : memref<1x20xf32, #tpu.memory_space<vmem>>, vector<1x20xf32>
      %14 = vector.broadcast %13 : vector<1x20xf32> to vector<16x20xf32>
      %15 = arith.addf %12, %14 : vector<16x20xf32>
      %c0_14 = arith.constant 0 : index
      %c0_15 = arith.constant 0 : index
      %16 = vector.load %arg6[%c0_14, %c0_15] : memref<16x20xf32, #tpu.memory_space<vmem>>, vector<16x20xf32>
      tpu.vector_store %arg6[%c0_14, %c0_15], %15 {strides = array<i32>} : memref<16x20xf32, #tpu.memory_space<vmem>>, vector<16x20xf32>,
    } else {
    }
    return
  }
  func.func @transform_0(%arg0: i32, %arg1: i32, %arg2: i32) -> (i32, i32) {
    %c0_i32 = arith.constant 0 : i32
    return %arg0, %arg2 : i32, i32
  }
  func.func @transform_1(%arg0: i32, %arg1: i32, %arg2: i32) -> (i32, i32) {
    %c0_i32 = arith.constant 0 : i32
    return %arg2, %arg1 : i32, i32
  }
  func.func @transform_2(%arg0: i32, %arg1: i32, %arg2: i32) -> (i32, i32) {
    %c0_i32 = arith.constant 0 : i32
    %c0_i32_0 = arith.constant 0 : i32
    return %c0_i32, %arg1 : i32, i32
  }
  func.func @transform_3(%arg0: i32, %arg1: i32, %arg2: i32) -> (i32, i32) {
    %c0_i32 = arith.constant 0 : i32
    return %arg0, %arg1 : i32, i32
  }
}

</mosaic_0001>

<bundles_post_ra>
// kernel: transformer_forward.35
= control target key start
LH: loop header
LB: loop body
LE: loop exit
PB: predicated region body
PF: predicated region fallthrough
CT: control target
= control target key end

     0   :  { %vm28_vm0 = vcmask 261120   ;;  %v220_v0 = vmov 0.0   ;;  %vm221_vm1 = vmmov 0   ;;  %vm178_vm2 = vcmask 257024   ;;  %s293_s1 = inlined_call_operand.vmem [shape: bf16[32,32], index: 1, kind: input, shape index: {}]   ;;  %s294_s0 = inlined_call_operand.vmem [shape: bf16[16,32], index: 0, kind: input, shape index: {}]   ;;  %s295_s3 = inlined_call_operand.vmem [shape: bf16[16,32], index: 3, kind: input, shape index: {}]   ;;  %s296_s2 = inlined_call_operand.vmem [shape: f32[1,32], index: 2, kind: input, shape index: {}]   ;;  %s297_s4 = inlined_call_operand.vmem [shape: f32[1,32], index: 4, kind: input, shape index: {}]   ;;  %s298_s5 = inlined_call_operand.vmem [shape: f32[1,32], index: 5, kind: input, shape index: {}]   ;;  %s299_s6 = inlined_call_operand.vmem [shape: bf16[16,32], index: 6, kind: output, shape index: {}]  }
   0x1   :  { %203 = vmatprep.subr.bf16.mxu0 %v220_v0  ;;  %v213_v1 = vld [vmem:[%s293_s1] sm:$0xff]   ;;  %207 = vmatprep.mubr.msk.bf16.mxu0 %vm221_vm1, %v220_v0  ;;  %29 = vst.msk [vmem:[#allocation2] sm:$0xff] %vm28_vm0, %v220_v0  ;;  %30 = vst.msk [vmem:[#allocation2 + $0x8] sm:$0xff] %vm28_vm0, %v220_v0  ;;  %v214_v2 = vld [vmem:[%s293_s1 + $0x8] sm:$0xff]  }
   0x2   :  { %204 = vmatpush3.bf16.msra.mxu0 %v213_v1  ;;  %v215_v3 = vld [vmem:[%s294_s0] sm:$0xff]  }
   0x3   :  { %205 = vmatprep.subr.bf16.mxu0 %v220_v0  ;;  %v197_v12 = vld [vmem:[%s295_s3] sm:$0xff]  }
   0x4   :  { %v189_v13 = vld [vmem:[%s296_s2] ss:$0 sm:$0xff]  ;;  %v198_v14 = vunpack.c.l.bf16 %v197_v12  ;;  %v199_v17 = vunpack.c.h.bf16 %v197_v12 }
   0x5   :  { %v190_v41 = vld [vmem:[%s297_s4] ss:$0 sm:$0xff] }
   0x6   :  { %206 = vmatpush3.bf16.msra.mxu0 %v214_v2  ;;  %v191_v43 = vld [vmem:[%s298_s5] ss:$0 sm:$0xff] }
   0x8   :  { %v31_v4 = vld [vmem:[#allocation2] sm:$0xff]  ;;  %v32_v6 = vld [vmem:[#allocation2 + $0x8] sm:$0xff] }
   0x9   :  { %208 = vmatmul.mubr.msk.bf16.vlgmr.msra.gmra.mrb[0].mxu0 %vm28_vm0, %v215_v3 }
  0xdc   :  { %v94_v5 = vpop.f32.mrb[0].mxu0 }
  0xdd   :  { %v101_v7 = vadd.f32 %v94_v5, %v31_v4  ;;  %v209_v8 = vpop.f32.mrb[1].mxu0 }
  0xde   :  { %v97_v9 = vpop.f32.mrb[2].mxu0 }
  0xdf   :  { %103 = vst.msk [vmem:[#allocation2] sm:$0xff] %vm28_vm0, %v101_v7  ;;  %v102_v10 = vadd.f32 %v97_v9, %v32_v6  ;;  %v210_v11 = vpop.f32.mrb[3].mxu0 }
  0xe1   :  { %104 = vst.msk [vmem:[#allocation2 + $0x8] sm:$0xff] %vm28_vm0, %v102_v10 }
  0xe6   :  { %v108_v15 = vld [vmem:[#allocation2] sm:$0xff] }
  0xe7   :  { %v117_v16 = vadd.f32 %v189_v13, %v108_v15 }
  0xe8   :  { %v109_v18 = vld [vmem:[#allocation2 + $0x8] sm:$0xff] }
  0xe9   :  { %v123_v19 = vadd.f32 %v198_v14, %v117_v16  ;;  %v118_v20 = vadd.f32 %v189_v13, %v109_v18 }
  0xeb   :  { %v125_v21 = vsel %vm28_vm0, %v123_v19, 0.0  ;;  %v124_v22 = vadd.f32 %v199_v17, %v118_v20 }
  0xec   :  { %126 = vadd.xlane.f32.xlu0 %v125_v21 }
  0xed   :  { %v128_v23 = vsel %vm28_vm0, %v124_v22, 0.0 }
  0xf0   :  { %129 = vadd.xlane.f32.xlu0 %v128_v23 }
 0x179   :  { %v127_v24 = vpop.xlane.xlu0 %126 }
 0x17a   :  { %v132_v25 = vmul.f32 0.03125, %v127_v24 }
 0x17c   :  { %v134_v26 = vsub.f32 %v123_v19, %v132_v25 }
 0x17d   :  { %v130_v27 = vpop.xlane.xlu0 %129 }
 0x17e   :  { %v133_v28 = vmul.f32 0.03125, %v130_v27  ;;  %v136_v29 = vmul.f32 %v134_v26, %v134_v26 }
 0x180   :  { %v135_v30 = vsub.f32 %v124_v22, %v133_v28  ;;  %v138_v31 = vsel %vm28_vm0, %v136_v29, 0.0 }
 0x181   :  { %139 = vadd.xlane.f32.xlu1 %v138_v31 }
 0x182   :  { %v137_v32 = vmul.f32 %v135_v30, %v135_v30 }
 0x184   :  { %v141_v33 = vsel %vm28_vm0, %v137_v32, 0.0 }
 0x185   :  { %142 = vadd.xlane.f32.xlu1 %v141_v33 }
 0x20e   :  { %v140_v34 = vpop.xlane.xlu1 %139 }
 0x20f   :  { %v144_v35 = vmul.f32 0.03125, %v140_v34 }
 0x211   :  { %v146_v36 = vadd.f32 1e-05, %v144_v35 }
 0x212   :  { %v143_v37 = vpop.xlane.xlu1 %142 }
 0x213   :  { %216 = vrsqrt.f32 %v146_v36  ;;  %v145_v38 = vmul.f32 0.03125, %v143_v37 }
 0x215   :  { %v147_v39 = vadd.f32 1e-05, %v145_v38 }
 0x217   :  { %218 = vrsqrt.f32 %v147_v39 }
 0x21d   :  { %v217_v40 = vpop.eup %216 }
 0x21e   :  { %v150_v42 = vmul.f32 %v217_v40, %v134_v26 }
 0x220   :  { %v159_v44 = vmul.f32 %v190_v41, %v150_v42 }
 0x221   :  { %v219_v45 = vpop.eup %218 }
 0x222   :  { %v168_v46 = vadd.f32 %v191_v43, %v159_v44  ;;  %v151_v47 = vmul.f32 %v219_v45, %v135_v30 }
 0x224   :  { %v194_v48 = vpack.c.bf16 %v168_v46, %v168_v46  ;;  %v160_v49 = vmul.f32 %v190_v41, %v151_v47 }
 0x226   :  { %179 = vst.msk [vmem:[%s299_s6] sm:$0xf] %vm178_vm2, %v194_v48  ;;  %v169_v50 = vadd.f32 %v191_v43, %v160_v49 }
 0x228   :  { %v195_v51 = vpack.c.bf16 %v169_v50, %v169_v50 }
 0x22a   :  { %180 = vst.msk [vmem:[%s299_s6 + $0x4] sm:$0xf] %vm178_vm2, %v195_v51 }

// kernel: transformer_forward.36
= control target key start
LH: loop header
LB: loop body
LE: loop exit
PB: predicated region body
PF: predicated region fallthrough
CT: control target
= control target key end

     0   :  { %vm19_vm0 = vcmask 261120   ;;  %v150_v0 = vmov 0.0   ;;  %vm151_vm1 = vmmov 0   ;;  %vm118_vm2 = vcmask 257024   ;;  %s195_s1 = inlined_call_operand.vmem [shape: bf16[32,32], index: 1, kind: input, shape index: {}]   ;;  %s196_s0 = inlined_call_operand.vmem [shape: bf16[16,32], index: 0, kind: input, shape index: {}]   ;;  %s197_s2 = inlined_call_operand.vmem [shape: f32[1,32], index: 2, kind: input, shape index: {}]   ;;  %s198_s3 = inlined_call_operand.vmem [shape: bf16[16,32], index: 3, kind: output, shape index: {}]  }
   0x1   :  { %137 = vmatprep.subr.bf16.mxu0 %v150_v0  ;;  %v147_v1 = vld [vmem:[%s195_s1] sm:$0xff]   ;;  %141 = vmatprep.mubr.msk.bf16.mxu0 %vm151_vm1, %v150_v0  ;;  %20 = vst.msk [vmem:[#allocation2] sm:$0xff] %vm19_vm0, %v150_v0  ;;  %21 = vst.msk [vmem:[#allocation2 + $0x8] sm:$0xff] %vm19_vm0, %v150_v0  ;;  %v148_v2 = vld [vmem:[%s195_s1 + $0x8] sm:$0xff]  }
   0x2   :  { %138 = vmatpush3.bf16.msra.mxu0 %v147_v1  ;;  %v149_v3 = vld [vmem:[%s196_s0] sm:$0xff]  }
   0x3   :  { %139 = vmatprep.subr.bf16.mxu0 %v150_v0  ;;  %v129_v12 = vld [vmem:[%s197_s2] ss:$0 sm:$0xff] }
   0x6   :  { %140 = vmatpush3.bf16.msra.mxu0 %v148_v2 }
   0x8   :  { %v22_v4 = vld [vmem:[#allocation2] sm:$0xff]  ;;  %v23_v6 = vld [vmem:[#allocation2 + $0x8] sm:$0xff] }
   0x9   :  { %142 = vmatmul.mubr.msk.bf16.vlgmr.msra.gmra.mrb[0].mxu0 %vm19_vm0, %v149_v3 }
  0xdc   :  { %v85_v5 = vpop.f32.mrb[0].mxu0 }
  0xdd   :  { %v92_v7 = vadd.f32 %v85_v5, %v22_v4  ;;  %v143_v8 = vpop.f32.mrb[1].mxu0 }
  0xde   :  { %v88_v9 = vpop.f32.mrb[2].mxu0 }
  0xdf   :  { %94 = vst.msk [vmem:[#allocation2] sm:$0xff] %vm19_vm0, %v92_v7  ;;  %v93_v10 = vadd.f32 %v88_v9, %v23_v6  ;;  %v144_v11 = vpop.f32.mrb[3].mxu0 }
  0xe1   :  { %95 = vst.msk [vmem:[#allocation2 + $0x8] sm:$0xff] %vm19_vm0, %v93_v10 }
  0xe6   :  { %v99_v13 = vld [vmem:[#allocation2] sm:$0xff] }
  0xe7   :  { %v108_v14 = vadd.f32 %v129_v12, %v99_v13 }
  0xe8   :  { %v100_v15 = vld [vmem:[#allocation2 + $0x8] sm:$0xff] }
  0xe9   :  { %v132_v16 = vpack.c.bf16 %v108_v14, %v108_v14  ;;  %v109_v17 = vadd.f32 %v129_v12, %v100_v15 }
  0xeb   :  { %119 = vst.msk [vmem:[%s198_s3] sm:$0xf] %vm118_vm2, %v132_v16  ;;  %v133_v18 = vpack.c.bf16 %v109_v17, %v109_v17 }
  0xed   :  { %120 = vst.msk [vmem:[%s198_s3 + $0x4] sm:$0xf] %vm118_vm2, %v133_v18 }

// kernel: transformer_forward.33
= control target key start
LH: loop header
LB: loop body
LE: loop exit
PB: predicated region body
PF: predicated region fallthrough
CT: control target
= control target key end

     0   :  { %vm19_vm0 = vcmask 785408   ;;  %v151_v0 = vmov 0.0   ;;  %vm152_vm1 = vmmov 0   ;;  %vm47_vm2 = vcmask 261120   ;;  %s195_s1 = inlined_call_operand.vmem [shape: bf16[32,96], index: 1, kind: input, shape index: {}]   ;;  %s196_s0 = inlined_call_operand.vmem [shape: bf16[16,32], index: 0, kind: input, shape index: {}]   ;;  %s197_s2 = inlined_call_operand.vmem [shape: f32[1,96], index: 2, kind: input, shape index: {}]   ;;  %s198_s3 = inlined_call_operand.vmem [shape: bf16[16,96], index: 3, kind: output, shape index: {}]  }
   0x1   :  { %138 = vmatprep.subr.bf16.mxu0 %v151_v0  ;;  %v148_v1 = vld [vmem:[%s195_s1] sm:$0xff]   ;;  %142 = vmatprep.mubr.msk.bf16.mxu0 %vm152_vm1, %v151_v0  ;;  %20 = vst.msk [vmem:[#allocation2] sm:$0xff] %vm19_vm0, %v151_v0  ;;  %21 = vst.msk [vmem:[#allocation2 + $0x8] sm:$0xff] %vm19_vm0, %v151_v0  ;;  %v149_v2 = vld [vmem:[%s195_s1 + $0x8] sm:$0xff]   ;;  %vm119_vm3 = vcmask 781312  }
   0x2   :  { %139 = vmatpush3.bf16.msra.mxu0 %v148_v1  ;;  %v150_v3 = vld [vmem:[%s196_s0] sm:$0xff]  }
   0x3   :  { %140 = vmatprep.subr.bf16.mxu0 %v151_v0  ;;  %v130_v12 = vld [vmem:[%s197_s2] ss:$0 sm:$0xff] }
   0x6   :  { %141 = vmatpush3.bf16.msra.mxu0 %v149_v2 }
   0x8   :  { %v22_v4 = vld [vmem:[#allocation2] sm:$0xff]  ;;  %v23_v6 = vld [vmem:[#allocation2 + $0x8] sm:$0xff] }
   0x9   :  { %143 = vmatmul.mubr.msk.bf16.vlgmr.msra.gmra.mrb[0].mxu0 %vm47_vm2, %v150_v3 }
  0xdc   :  { %v85_v5 = vpop.f32.mrb[0].mxu0 }
  0xdd   :  { %v92_v7 = vadd.f32 %v85_v5, %v22_v4  ;;  %v144_v8 = vpop.f32.mrb[1].mxu0 }
  0xde   :  { %v88_v9 = vpop.f32.mrb[2].mxu0 }
  0xdf   :  { %95 = vst.msk [vmem:[#allocation2] sm:$0xff] %vm19_vm0, %v92_v7  ;;  %v93_v10 = vadd.f32 %v88_v9, %v23_v6  ;;  %v145_v11 = vpop.f32.mrb[3].mxu0 }
  0xe1   :  { %96 = vst.msk [vmem:[#allocation2 + $0x8] sm:$0xff] %vm19_vm0, %v93_v10 }
  0xe6   :  { %v100_v13 = vld [vmem:[#allocation2] sm:$0xff] }
  0xe7   :  { %v109_v14 = vadd.f32 %v130_v12, %v100_v13 }
  0xe8   :  { %v101_v15 = vld [vmem:[#allocation2 + $0x8] sm:$0xff] }
  0xe9   :  { %v133_v16 = vpack.c.bf16 %v109_v14, %v109_v14  ;;  %v110_v17 = vadd.f32 %v130_v12, %v101_v15 }
  0xeb   :  { %120 = vst.msk [vmem:[%s198_s3] sm:$0xf] %vm119_vm3, %v133_v16  ;;  %v134_v18 = vpack.c.bf16 %v110_v17, %v110_v17 }
  0xed   :  { %121 = vst.msk [vmem:[%s198_s3 + $0x4] sm:$0xf] %vm119_vm3, %v134_v18 }

// kernel: transformer_forward.34
= control target key start
LH: loop header
LB: loop body
LE: loop exit
PB: predicated region body
PF: predicated region fallthrough
CT: control target
= control target key end

     0   :  { %s913_s12 = smov 0   ;;  %s1026_s0 = inlined_call_operand.vmem [shape: bf16[2,8,32], index: 0, kind: input, shape index: {}]   ;;  %s1027_s1 = inlined_call_operand.vmem [shape: bf16[2,8,32], index: 1, kind: input, shape index: {}]   ;;  %s1028_s2 = inlined_call_operand.vmem [shape: bf16[2,8,32], index: 2, kind: input, shape index: {}]   ;;  %s1029_s3 = inlined_call_operand.vmem [shape: bf16[2,8,32], index: 3, kind: output, shape index: {}]  }
   0x1 LB: > { %s757_s13 = sadd.s32 4294967295, %s883_s12   ;;  %p761_p0 = scmp.ge.s32.totalorder %s883_s12, 1  ;;  %s883_s12 = sphi %s913_s12, %s13_s12  }
   0x2   : > { %p154_p1 = scmp.lt.s32.totalorder %s883_s12, 3 }
   0x4   : > { %p155_p2 = pnand %p761_p0, %p154_p1 }
   0x5   : > { %p184_p3 = scmp.lt.s32.totalorder (!%p155_p2), %s757_s13, 1  ;;  %v885_v0 = vmov (!%p155_p2), 0.0   ;;  %vm886_vm0 = vmmov (!%p155_p2), 0   ;;  %vm211_vm1 = vcmask (!%p155_p2), 64512   ;;  %v206_v5 = vlaneseq (!%p155_p2)  ;;  %s887_s21 = smov (!%p155_p2), 120  }
   0x6   : > { %158 = sbr.rel (%p155_p2) target bundleno = 1475 (0x5c3), region = 32  ;;  %795 = vmatprep.subr.bf16.mxu0 (!%p155_p2), %v885_v0  ;;  %797 = vmatprep.mubr.msk.bf16.mxu0 (!%p155_p2), %vm886_vm0, %v885_v0  ;;  %s888_s22 = smov (!%p155_p2), 112   ;;  %vm274_vm3 = vcmask (!%p155_p2), 1043456   ;;  %vm673_vm4 = vcmask (!%p155_p2), 130048   ;;  %vm675_vm5 = vcmask (!%p155_p2), 195584   ;;  %vm678_vm6 = vcmask (!%p155_p2), 257024  }
   0x7   : > { %801 = vmatprep.subr.bf16.mxu1 (!%p155_p2), %v885_v0  ;;  %803 = vmatprep.mubr.msk.bf16.mxu1 (!%p155_p2), %vm886_vm0, %v885_v0  ;;  %v942_v6 = vshrl.u32 (!%p155_p2), %v206_v5, 7  ;;  %v944_v7 = vand.u32 (!%p155_p2), 127, %v206_v5  ;;  %s889_s23 = smov (!%p155_p2), 104   ;;  %s890_s27 = smov (!%p155_p2), 8  }
   0x8   : > { %s891_s28 = smov (!%p155_p2), 16   ;;  %s892_s29 = smov (!%p155_p2), 24  }
   0x9   : > { %vm210_vm2 = vcmp.ge.s32.totalorder (!%p155_p2), %v942_v6, %v944_v7 }
   0xd   : > { %s1031_s13 = smov (!%p184_p3, %s757_s13), 1 }
   0xe   : > { %s927_s14 = sshll.u32 %s1031_s13, 2 }
   0xf   : > { %s191_s17 = scalar_lea.vmem %s1027_s1, %s927_s14  ;;  %s187_s20 = scalar_lea.vmem %s1026_s0, %s927_s14 }
  0x10   : > { %v204_v1 = vld [vmem:[%s191_s17] sm:$0xf]  ;;  %s195_s26 = scalar_lea.vmem %s1028_s2, %s927_s14  ;;  %s199_s5 = scalar_lea.vmem %s1029_s3, %s927_s14 }
  0x11   : > { %v216_v2 = vsel %vm211_vm1, %v204_v1, 0  ;;  %v202_v3 = vld [vmem:[%s187_s20] sm:$0xf]  ;;  %v769_v14 = vcombine.low %v204_v1, %v204_v1 }
  0x12   : > { %796 = vmatpush3.bf16.xpose.msra.mxu0 %v216_v2  ;;  %v203_v4 = vmul.bf16 1052065461, %v202_v3  ;;  %v962_v21 = vld [vmem:[%s195_s26] sm:$0xf] }
  0x13   : > { %813 = vmatprep.subr.bf16.mxu0 %v885_v0  ;;  %326 = vrot.lane.b32.xlu1 %v769_v14, %s887_s21  ;;  %v276_v22 = vsel %vm274_vm3, %v962_v21, 0  ;;  %v771_v5 = vcombine.low %v962_v21, %v962_v21 }
  0x14   : > { %v768_v15 = vcombine.low %v203_v4, %v203_v4  ;;  %802 = vmatpush3.bf16.msra.mxu1 %v276_v22 }
  0x15   : > { %807 = vmatprep.subr.bf16.mxu1 %v885_v0 }
  0x17   : > { %321 = vrot.lane.b32.xlu1 %v768_v15, %s887_s21 }
  0x19   : > { %798 = vmatmul.mubr.msk.bf16.vlgmr.msra.gmra.mrb[0].mxu0 %vm211_vm1, %v203_v4 }
  0x1a   : > { %815 = vmatprep.mubr.msk.bf16.mxu0 %vm886_vm0, %v885_v0 }
  0x1b   : > { %438 = vrot.lane.b32.xlu1 %v768_v15, %s888_s22 }
  0x1f   : > { %551 = vrot.lane.b32.xlu1 %v769_v14, %s889_s23 }
  0x23   : > { %549 = vrot.lane.b32.xlu1 %v768_v15, %s889_s23 }
  0x85   : > { %v327_v25 = vpop.permute.xlu1 %326 }
  0x86   : > { %v332_v27 = vsel %vm211_vm1, %v327_v25, 0 }
  0x89   : > { %v322_v29 = vpop.permute.xlu1 %321 }
  0x8d   : > { %v439_v31 = vpop.permute.xlu1 %438 }
  0x91   : > { %v552_v33 = vpop.permute.xlu1 %551 }
  0x92   : > { %v557_v34 = vsel %vm211_vm1, %v552_v33, 0 }
  0x95   : > { %v550_v35 = vpop.permute.xlu1 %549 }
  0xec   : > { %v252_v8 = vpop.f32.mrb[0].mxu0 }
  0xed   : > { %v258_v9 = vsel %vm210_vm2, %v252_v8, -1e+30  ;;  %v799_v10 = vpop.f32.mrb[1].mxu0 }
  0xee   : > { %v255_v11 = vpop.f32.mrb[2].mxu0  ;;  %v259_v12 = vsel %vm211_vm1, %v258_v9, -inf }
  0xef   : > { %260 = vmax.xlane.f32.xlu0 %v259_v12  ;;  %v800_v13 = vpop.f32.mrb[3].mxu0 }
 0x17c   : > { %v261_v16 = vpop.xlane.xlu0 %260 }
 0x17d   : > { %v262_v17 = vsub.f32 %v258_v9, %v261_v16 }
 0x17f   : > { %v263_v18 = vmul.f32 1.442695, %v262_v17 }
 0x181   : > { %861 = vpow2.f32 %v263_v18 }
 0x18b   : > { %v862_v19 = vpop.eup %861 }
 0x18c   : > { %v265_v20 = vsel %vm211_vm1, %v862_v19, 0.0 }
 0x18d   : > { %266 = vadd.xlane.f32.xlu0 %v265_v20 }
 0x1a3   : > { %440 = vrot.lane.b32.xlu0 %v769_v14, %s888_s22 }
 0x21a   : > { %v267_v23 = vpop.xlane.xlu0 %266 }
 0x21b   : > { %863 = vrcp.f32 %v267_v23 }
 0x21e   : > { %v441_v30 = vpop.permute.xlu0 %440 }
 0x21f   : > { %v446_v32 = vsel %vm211_vm1, %v441_v30, 0 }
 0x225   : > { %v864_v24 = vpop.eup %863 }
 0x226   : > { %v269_v26 = vmul.f32 %v864_v24, %v862_v19 }
 0x228   : > { %v270_v28 = vpack.c.bf16 %v269_v26, %v269_v26 }
 0x22a   : > { %804 = vmatmul.mubr.msk.bf16.vlgmr.msra.gmra.mrb[0].mxu1 %vm211_vm1, %v270_v28 }
 0x22b   : > { %808 = vmatpush3.bf16.xpose.msra.mxu1 %v332_v27  ;;  %809 = vmatprep.mubr.msk.bf16.mxu1 %vm886_vm0, %v885_v0 }
 0x22c   : > { %819 = vmatprep.subr.bf16.mxu1 %v885_v0 }
 0x232   : > { %810 = vmatmul.mubr.msk.bf16.vlgmr.msra.gmra.mrb[4].mxu1 %vm211_vm1, %v322_v29 }
 0x233   : > { %820 = vmatpush3.bf16.xpose.msra.mxu1 %v446_v32  ;;  %821 = vmatprep.mubr.msk.bf16.mxu1 %vm886_vm0, %v885_v0 }
 0x234   : > { %831 = vmatprep.subr.bf16.mxu1 %v885_v0 }
 0x23a   : > { %822 = vmatmul.mubr.msk.bf16.vlgmr.msra.gmra.mrb[8].mxu1 %vm211_vm1, %v439_v31 }
 0x23b   : > { %832 = vmatpush3.bf16.xpose.msra.mxu1 %v557_v34  ;;  %833 = vmatprep.mubr.msk.bf16.mxu1 %vm886_vm0, %v885_v0 }
 0x242   : > { %834 = vmatmul.mubr.msk.bf16.vlgmr.msra.gmra.mrb[12].mxu1 %vm211_vm1, %v550_v35 }
 0x2fd   : > { %v983_v36 = vpop.f32.mrb[0].mxu1 }
 0x2fe   : > { %v805_v37 = vpop.f32.mrb[1].mxu1 }
 0x2ff   : > { %v315_v38 = vpop.f32.mrb[2].mxu1 }
 0x300   : > { %v806_v39 = vpop.f32.mrb[3].mxu1 }
 0x305   : > { %v368_v40 = vpop.f32.mrb[4].mxu1 }
 0x306   : > { %v374_v41 = vsel %vm210_vm2, %v368_v40, -1e+30  ;;  %v811_v42 = vpop.f32.mrb[5].mxu1 }
 0x307   : > { %v371_v43 = vpop.f32.mrb[6].mxu1  ;;  %v375_v44 = vsel %vm211_vm1, %v374_v41, -inf }
 0x308   : > { %376 = vmax.xlane.f32.xlu1 %v375_v44  ;;  %v812_v45 = vpop.f32.mrb[7].mxu1 }
 0x30d   : > { %v482_v46 = vpop.f32.mrb[8].mxu1 }
 0x30e   : > { %v488_v47 = vsel %vm210_vm2, %v482_v46, -1e+30  ;;  %v823_v48 = vpop.f32.mrb[9].mxu1 }
 0x30f   : > { %v489_v49 = vsel %vm211_vm1, %v488_v47, -inf  ;;  %v485_v50 = vpop.f32.mrb[10].mxu1 }
 0x310   : > { %490 = vmax.xlane.f32.xlu0 %v489_v49  ;;  %v824_v51 = vpop.f32.mrb[11].mxu1 }
 0x315   : > { %v593_v52 = vpop.f32.mrb[12].mxu1 }
 0x316   : > { %v599_v53 = vsel %vm210_vm2, %v593_v52, -1e+30  ;;  %v835_v54 = vpop.f32.mrb[13].mxu1 }
 0x317   : > { %v600_v55 = vsel %vm211_vm1, %v599_v53, -inf  ;;  %v596_v56 = vpop.f32.mrb[14].mxu1 }
 0x318   : > { %601 = vmax.xlane.f32.xlu1 %v600_v55  ;;  %v836_v57 = vpop.f32.mrb[15].mxu1 }
 0x395   : > { %v377_v58 = vpop.xlane.xlu1 %376 }
 0x396   : > { %v378_v59 = vsub.f32 %v374_v41, %v377_v58 }
 0x398   : > { %v379_v60 = vmul.f32 1.442695, %v378_v59 }
 0x39a   : > { %865 = vpow2.f32 %v379_v60 }
 0x39d   : > { %v491_v61 = vpop.xlane.xlu0 %490 }
 0x39e   : > { %v492_v62 = vsub.f32 %v488_v47, %v491_v61 }
 0x3a0   : > { %v493_v63 = vmul.f32 1.442695, %v492_v62 }
 0x3a2   : > { %867 = vpow2.f32 %v493_v63 }
 0x3a4   : > { %v866_v1 = vpop.eup %865 }
 0x3a5   : > { %v381_v2 = vsel %vm211_vm1, %v866_v1, 0.0  ;;  %v602_v6 = vpop.xlane.xlu1 %601 }
 0x3a6   : > { %382 = vadd.xlane.f32.xlu1 %v381_v2  ;;  %v603_v7 = vsub.f32 %v599_v53, %v602_v6 }
 0x3a8   : > { %v604_v8 = vmul.f32 1.442695, %v603_v7 }
 0x3aa   : > { %869 = vpow2.f32 %v604_v8 }
 0x3ac   : > { %v868_v3 = vpop.eup %867 }
 0x3ad   : > { %v495_v4 = vsel %vm211_vm1, %v868_v3, 0.0 }
 0x3ae   : > { %496 = vadd.xlane.f32.xlu0 %v495_v4 }
 0x3b4   : > { %v870_v9 = vpop.eup %869 }
 0x3b5   : > { %v606_v10 = vsel %vm211_vm1, %v870_v9, 0.0 }
 0x3b7   : > { %501 = vrot.lane.b32.xlu1 %v771_v5, %s888_s22 }
 0x3c4   : > { %390 = vrot.lane.b32.xlu0 %v771_v5, %s887_s21 }
 0x3db   : > { %607 = vadd.xlane.f32.xlu1 %v606_v10 }
 0x3ec   : > { %612 = vrot.lane.b32.xlu1 %v771_v5, %s889_s23 }
 0x433   : > { %v383_v11 = vpop.xlane.xlu1 %382 }
 0x434   : > { %871 = vrcp.f32 %v383_v11 }
 0x437   : > { %v502_v17 = vpop.permute.xlu1 %501 }
 0x438   : > { %v507_v19 = vsel %vm274_vm3, %v502_v17, 0 }
 0x43b   : > { %v497_v12 = vpop.xlane.xlu0 %496 }
 0x43c   : > { %873 = vrcp.f32 %v497_v12 }
 0x43e   : > { %v872_v13 = vpop.eup %871 }
 0x43f   : > { %v385_v14 = vmul.f32 %v872_v13, %v866_v1  ;;  %v391_v15 = vpop.permute.xlu0 %390 }
 0x440   : > { %v396_v16 = vsel %vm274_vm3, %v391_v15, 0 }
 0x441   : > { %814 = vmatpush3.bf16.msra.mxu0 %v396_v16  ;;  %v386_v18 = vpack.c.bf16 %v385_v14, %v385_v14 }
 0x442   : > { %825 = vmatprep.subr.bf16.mxu0 %v885_v0 }
 0x444   : > { %816 = vmatmul.mubr.msk.bf16.vlgmr.msra.gmra.mrb[4].mxu0 %vm211_vm1, %v386_v18 }
 0x445   : > { %826 = vmatpush3.bf16.msra.mxu0 %v507_v19  ;;  %827 = vmatprep.mubr.msk.bf16.mxu0 %vm886_vm0, %v885_v0 }
 0x446   : > { %v874_v20 = vpop.eup %873  ;;  %837 = vmatprep.subr.bf16.mxu0 %v885_v0 }
 0x447   : > { %v499_v21 = vmul.f32 %v874_v20, %v868_v3 }
 0x449   : > { %v500_v22 = vpack.c.bf16 %v499_v21, %v499_v21 }
 0x44c   : > { %828 = vmatmul.mubr.msk.bf16.vlgmr.msra.gmra.mrb[8].mxu0 %vm211_vm1, %v500_v22 }
 0x44d   : > { %839 = vmatprep.mubr.msk.bf16.mxu0 %vm886_vm0, %v885_v0 }
 0x468   : > { %v608_v23 = vpop.xlane.xlu1 %607 }
 0x469   : > { %875 = vrcp.f32 %v608_v23 }
 0x46c   : > { %v613_v24 = vpop.permute.xlu1 %612 }
 0x46d   : > { %v618_v25 = vsel %vm274_vm3, %v613_v24, 0 }
 0x46e   : > { %838 = vmatpush3.bf16.msra.mxu0 %v618_v25 }
 0x473   : > { %v876_v26 = vpop.eup %875 }
 0x474   : > { %v610_v27 = vmul.f32 %v876_v26, %v870_v9 }
 0x476   : > { %v611_v28 = vpack.c.bf16 %v610_v27, %v610_v27 }
 0x478   : > { %840 = vmatmul.mubr.msk.bf16.vlgmr.msra.gmra.mrb[12].mxu0 %vm211_vm1, %v611_v28 }
 0x517   : > { %v432_v29 = vpop.f32.mrb[4].mxu0 }
 0x518   : > { %661 = vrot.lane.b32.xlu0 %v432_v29, %s890_s27  ;;  %v817_v30 = vpop.f32.mrb[5].mxu0 }
 0x519   : > { %v435_v31 = vpop.f32.mrb[6].mxu0 }
 0x51a   : > { %v818_v32 = vpop.f32.mrb[7].mxu0 }
 0x51f   : > { %v543_v33 = vpop.f32.mrb[8].mxu0 }
 0x520   : > { %665 = vrot.lane.b32.xlu1 %v543_v33, %s891_s28  ;;  %v829_v0 = vpop.f32.mrb[9].mxu0 }
 0x521   : > { %v546_v34 = vpop.f32.mrb[10].mxu0 }
 0x522   : > { %v830_v35 = vpop.f32.mrb[11].mxu0 }
 0x54b   : > { %v654_v37 = vpop.f32.mrb[12].mxu0 }
 0x54c   : > { %669 = vrot.lane.b32.xlu0 %v654_v37, %s892_s29  ;;  %v841_v38 = vpop.f32.mrb[13].mxu0 }
 0x54d   : > { %v657_v39 = vpop.f32.mrb[14].mxu0 }
 0x54e   : > { %v842_v40 = vpop.f32.mrb[15].mxu0 }
 0x58a   : > { %v662_v41 = vpop.permute.xlu0 %661 }
 0x58b   : > { %v672_v43 = vsel %vm211_vm1, %v983_v36, %v662_v41 }
 0x592   : > { %v666_v42 = vpop.permute.xlu1 %665 }
 0x593   : > { %v674_v44 = vsel %vm673_vm4, %v672_v43, %v666_v42 }
 0x5be   : > { %v670_v45 = vpop.permute.xlu0 %669 }
 0x5bf   : > { %v676_v46 = vsel %vm675_vm5, %v674_v44, %v670_v45 }
 0x5c0   : > { %v677_v47 = vpack.c.bf16 %v676_v46, %v676_v46 }
 0x5c2   : > { %679 = vst.msk [vmem:[%s199_s5] sm:$0xf] %vm678_vm6, %v677_v47 }
 0x5c3 PF: > { %s13_s12 = sadd.s32 1, %s883_s12  }
 0x5c4   : > { %p10_p4 = scmp.ge.s32.totalorder %s13_s12, 4  }
 0x5c6   :  { %12 = sbr.rel (!%p10_p4) target bundleno = 1 (0x1), region = 68 }

// kernel: transformer_forward.37
= control target key start
LH: loop header
LB: loop body
LE: loop exit
PB: predicated region body
PF: predicated region fallthrough
CT: control target
= control target key end

     0   :  { %vm19_vm0 = vcmask 523264   ;;  %v151_v0 = vmov 0.0   ;;  %vm152_vm1 = vmmov 0   ;;  %vm47_vm2 = vcmask 261120   ;;  %s195_s1 = inlined_call_operand.vmem [shape: bf16[32,64], index: 1, kind: input, shape index: {}]   ;;  %s196_s0 = inlined_call_operand.vmem [shape: bf16[16,32], index: 0, kind: input, shape index: {}]   ;;  %s197_s2 = inlined_call_operand.vmem [shape: f32[1,64], index: 2, kind: input, shape index: {}]   ;;  %s198_s3 = inlined_call_operand.vmem [shape: bf16[16,64], index: 3, kind: output, shape index: {}]  }
   0x1   :  { %138 = vmatprep.subr.bf16.mxu0 %v151_v0  ;;  %v148_v1 = vld [vmem:[%s195_s1] sm:$0xff]   ;;  %142 = vmatprep.mubr.msk.bf16.mxu0 %vm152_vm1, %v151_v0  ;;  %20 = vst.msk [vmem:[#allocation2] sm:$0xff] %vm19_vm0, %v151_v0  ;;  %21 = vst.msk [vmem:[#allocation2 + $0x8] sm:$0xff] %vm19_vm0, %v151_v0  ;;  %v149_v2 = vld [vmem:[%s195_s1 + $0x8] sm:$0xff]   ;;  %vm119_vm3 = vcmask 519168  }
   0x2   :  { %139 = vmatpush3.bf16.msra.mxu0 %v148_v1  ;;  %v150_v3 = vld [vmem:[%s196_s0] sm:$0xff]  }
   0x3   :  { %140 = vmatprep.subr.bf16.mxu0 %v151_v0  ;;  %v130_v12 = vld [vmem:[%s197_s2] ss:$0 sm:$0xff] }
   0x6   :  { %141 = vmatpush3.bf16.msra.mxu0 %v149_v2 }
   0x8   :  { %v22_v4 = vld [vmem:[#allocation2] sm:$0xff]  ;;  %v23_v6 = vld [vmem:[#allocation2 + $0x8] sm:$0xff] }
   0x9   :  { %143 = vmatmul.mubr.msk.bf16.vlgmr.msra.gmra.mrb[0].mxu0 %vm47_vm2, %v150_v3 }
  0xdc   :  { %v85_v5 = vpop.f32.mrb[0].mxu0 }
  0xdd   :  { %v92_v7 = vadd.f32 %v85_v5, %v22_v4  ;;  %v144_v8 = vpop.f32.mrb[1].mxu0 }
  0xde   :  { %v88_v9 = vpop.f32.mrb[2].mxu0 }
  0xdf   :  { %95 = vst.msk [vmem:[#allocation2] sm:$0xff] %vm19_vm0, %v92_v7  ;;  %v93_v10 = vadd.f32 %v88_v9, %v23_v6  ;;  %v145_v11 = vpop.f32.mrb[3].mxu0 }
  0xe1   :  { %96 = vst.msk [vmem:[#allocation2 + $0x8] sm:$0xff] %vm19_vm0, %v93_v10 }
  0xe6   :  { %v100_v13 = vld [vmem:[#allocation2] sm:$0xff] }
  0xe7   :  { %v109_v14 = vadd.f32 %v130_v12, %v100_v13 }
  0xe8   :  { %v101_v15 = vld [vmem:[#allocation2 + $0x8] sm:$0xff] }
  0xe9   :  { %v133_v16 = vpack.c.bf16 %v109_v14, %v109_v14  ;;  %v110_v17 = vadd.f32 %v130_v12, %v101_v15 }
  0xeb   :  { %120 = vst.msk [vmem:[%s198_s3] sm:$0xf] %vm119_vm3, %v133_v16  ;;  %v134_v18 = vpack.c.bf16 %v110_v17, %v110_v17 }
  0xed   :  { %121 = vst.msk [vmem:[%s198_s3 + $0x4] sm:$0xf] %vm119_vm3, %v134_v18 }

// kernel: transformer_forward.28
= control target key start
LH: loop header
LB: loop body
LE: loop exit
PB: predicated region body
PF: predicated region fallthrough
CT: control target
= control target key end

     0   :  { %vm34_vm0 = vcmask 261120   ;;  %v340_v0 = vmov 0.0   ;;  %vm341_vm1 = vmmov 0   ;;  %vm149_vm2 = vcmask 523264   ;;  %s438_s1 = inlined_call_operand.vmem [shape: bf16[32,64], index: 1, kind: input, shape index: {}]   ;;  %s439_s3 = inlined_call_operand.vmem [shape: bf16[64,32], index: 3, kind: input, shape index: {}]   ;;  %s440_s0 = inlined_call_operand.vmem [shape: bf16[16,32], index: 0, kind: input, shape index: {}, may-alias: {0,5}]   ;;  %s441_s2 = inlined_call_operand.vmem [shape: f32[1,64], index: 2, kind: input, shape index: {}]   ;;  %s442_s5 = inlined_call_operand.vmem [shape: bf16[16,32], index: 5, kind: input, shape index: {}, may-alias: {0,5}]   ;;  %s443_s4 = inlined_call_operand.vmem [shape: f32[1,32], index: 4, kind: input, shape index: {}]   ;;  %s444_s6 = inlined_call_operand.vmem [shape: f32[1,32], index: 6, kind: input, shape index: {}]   ;;  %s445_s7 = inlined_call_operand.vmem [shape: f32[1,32], index: 7, kind: input, shape index: {}]   ;;  %s446_s8 = inlined_call_operand.vmem [shape: bf16[16,32], index: 8, kind: output, shape index: {}]  }
   0x1   :  { %307 = vmatprep.subr.bf16.mxu0 %v340_v0  ;;  %v329_v1 = vld [vmem:[%s438_s1] sm:$0xff]   ;;  %311 = vmatprep.mubr.msk.bf16.mxu0 %vm341_vm1, %v340_v0  ;;  %35 = vst.msk [vmem:[#allocation2] sm:$0xff] %vm34_vm0, %v340_v0  ;;  %36 = vst.msk [vmem:[#allocation2 + $0x8] sm:$0xff] %vm34_vm0, %v340_v0  ;;  %v330_v2 = vld [vmem:[%s438_s1 + $0x8] sm:$0xff]   ;;  %vm271_vm3 = vcmask 257024  }
   0x2   :  { %315 = vmatprep.subr.bf16.mxu1 %v340_v0  ;;  %323 = vmatprep.mubr.msk.bf16.mxu1 %vm341_vm1, %v340_v0  ;;  %v332_v3 = vld [vmem:[%s439_s3] sm:$0xff]   ;;  %v333_v5 = vld [vmem:[%s439_s3 + $0x8] sm:$0xff]   ;;  %v334_v6 = vld [vmem:[%s439_s3 + $0x10] sm:$0xff]  }
   0x3   :  { %308 = vmatpush3.bf16.msra.mxu0 %v329_v1  ;;  %v331_v4 = vld [vmem:[%s440_s0] sm:$0xff]   ;;  %316 = vmatpush3.bf16.msra.mxu1 %v332_v3  ;;  %v335_v7 = vld [vmem:[%s439_s3 + $0x18] sm:$0xff]  }
   0x4   :  { %309 = vmatprep.subr.bf16.mxu0 %v340_v0  ;;  %317 = vmatprep.subr.bf16.mxu1 %v340_v0  ;;  %v278_v8 = vld [vmem:[%s441_s2] ss:$0 sm:$0xff] }
   0x5   :  { %v296_v26 = vld [vmem:[%s442_s5] sm:$0xff]  }
   0x6   :  { %v288_v27 = vld [vmem:[%s443_s4] ss:$0 sm:$0xff]  ;;  %v297_v28 = vunpack.c.l.bf16 %v296_v26  ;;  %v298_v31 = vunpack.c.h.bf16 %v296_v26 }
   0x7   :  { %310 = vmatpush3.bf16.msra.mxu0 %v330_v2  ;;  %318 = vmatpush3.bf16.msra.mxu1 %v333_v5  ;;  %v289_v55 = vld [vmem:[%s444_s6] ss:$0 sm:$0xff] }
   0x8   :  { %319 = vmatprep.subr.bf16.mxu1 %v340_v0  ;;  %v114_v18 = vld [vmem:[#allocation2] sm:$0xff]  ;;  %v115_v20 = vld [vmem:[#allocation2 + $0x8] sm:$0xff] }
   0x9   :  { %v290_v57 = vld [vmem:[%s445_s7] ss:$0 sm:$0xff] }
   0xa   :  { %312 = vmatmul.mubr.msk.bf16.vlgmr.msra.gmra.mrb[0].mxu0 %vm34_vm0, %v331_v4 }
   0xb   :  { %320 = vmatpush3.bf16.msra.mxu1 %v334_v6 }
   0xc   :  { %321 = vmatprep.subr.bf16.mxu1 %v340_v0 }
   0xf   :  { %322 = vmatpush3.bf16.msra.mxu1 %v335_v7 }
  0xdd   :  { %v105_v9 = vpop.f32.mrb[0].mxu0 }
  0xde   :  { %v106_v10 = vadd.f32 %v278_v8, %v105_v9  ;;  %v313_v11 = vpop.f32.mrb[1].mxu0 }
  0xdf   :  { %v108_v12 = vpop.f32.mrb[2].mxu0 }
  0xe0   :  { %v109_v13 = vadd.f32 %v278_v8, %v108_v12  ;;  %v314_v14 = vpop.f32.mrb[3].mxu0  ;;  %v112_v15 = vmax.f32 %v106_v10, 0.0 }
  0xe2   :  { %v113_v16 = vmax.f32 %v109_v13, 0.0 }
  0xe4   :  { %v116_v17 = vpack.c.bf16 %v113_v16, %v112_v15 }
  0xe6   :  { %324 = vmatmul.mubr.msk.bf16.vlgmr.msra.gmra.mrb[0].mxu1 %vm149_vm2, %v116_v17 }
 0x1b9   :  { %v187_v19 = vpop.f32.mrb[0].mxu1 }
 0x1ba   :  { %v194_v21 = vadd.f32 %v187_v19, %v114_v18  ;;  %v325_v22 = vpop.f32.mrb[1].mxu1 }
 0x1bb   :  { %v190_v23 = vpop.f32.mrb[2].mxu1 }
 0x1bc   :  { %196 = vst.msk [vmem:[#allocation2] sm:$0xff] %vm34_vm0, %v194_v21  ;;  %v195_v24 = vadd.f32 %v190_v23, %v115_v20  ;;  %v326_v25 = vpop.f32.mrb[3].mxu1 }
 0x1be   :  { %197 = vst.msk [vmem:[#allocation2 + $0x8] sm:$0xff] %vm34_vm0, %v195_v24 }
 0x1c3   :  { %v201_v29 = vld [vmem:[#allocation2] sm:$0xff] }
 0x1c4   :  { %v210_v30 = vadd.f32 %v288_v27, %v201_v29 }
 0x1c5   :  { %v202_v32 = vld [vmem:[#allocation2 + $0x8] sm:$0xff] }
 0x1c6   :  { %v216_v33 = vadd.f32 %v297_v28, %v210_v30  ;;  %v211_v34 = vadd.f32 %v288_v27, %v202_v32 }
 0x1c8   :  { %v218_v35 = vsel %vm34_vm0, %v216_v33, 0.0  ;;  %v217_v36 = vadd.f32 %v298_v31, %v211_v34 }
 0x1c9   :  { %219 = vadd.xlane.f32.xlu0 %v218_v35 }
 0x1ca   :  { %v221_v37 = vsel %vm34_vm0, %v217_v36, 0.0 }
 0x1cd   :  { %222 = vadd.xlane.f32.xlu0 %v221_v37 }
 0x256   :  { %v220_v38 = vpop.xlane.xlu0 %219 }
 0x257   :  { %v225_v39 = vmul.f32 0.03125, %v220_v38 }
 0x259   :  { %v227_v40 = vsub.f32 %v216_v33, %v225_v39 }
 0x25a   :  { %v223_v41 = vpop.xlane.xlu0 %222 }
 0x25b   :  { %v226_v42 = vmul.f32 0.03125, %v223_v41  ;;  %v229_v43 = vmul.f32 %v227_v40, %v227_v40 }
 0x25d   :  { %v228_v44 = vsub.f32 %v217_v36, %v226_v42  ;;  %v231_v45 = vsel %vm34_vm0, %v229_v43, 0.0 }
 0x25e   :  { %232 = vadd.xlane.f32.xlu1 %v231_v45 }
 0x25f   :  { %v230_v46 = vmul.f32 %v228_v44, %v228_v44 }
 0x261   :  { %v234_v47 = vsel %vm34_vm0, %v230_v46, 0.0 }
 0x262   :  { %235 = vadd.xlane.f32.xlu1 %v234_v47 }
 0x2eb   :  { %v233_v48 = vpop.xlane.xlu1 %232 }
 0x2ec   :  { %v237_v49 = vmul.f32 0.03125, %v233_v48 }
 0x2ee   :  { %v239_v50 = vadd.f32 1e-05, %v237_v49 }
 0x2ef   :  { %v236_v51 = vpop.xlane.xlu1 %235 }
 0x2f0   :  { %336 = vrsqrt.f32 %v239_v50  ;;  %v238_v52 = vmul.f32 0.03125, %v236_v51 }
 0x2f2   :  { %v240_v53 = vadd.f32 1e-05, %v238_v52 }
 0x2f4   :  { %338 = vrsqrt.f32 %v240_v53 }
 0x2fa   :  { %v337_v54 = vpop.eup %336 }
 0x2fb   :  { %v243_v56 = vmul.f32 %v337_v54, %v227_v40 }
 0x2fd   :  { %v252_v58 = vmul.f32 %v289_v55, %v243_v56 }
 0x2fe   :  { %v339_v59 = vpop.eup %338 }
 0x2ff   :  { %v261_v60 = vadd.f32 %v290_v57, %v252_v58  ;;  %v244_v61 = vmul.f32 %v339_v59, %v228_v44 }
 0x301   :  { %v293_v62 = vpack.c.bf16 %v261_v60, %v261_v60  ;;  %v253_v63 = vmul.f32 %v289_v55, %v244_v61 }
 0x303   :  { %272 = vst.msk [vmem:[%s446_s8] sm:$0xf] %vm271_vm3, %v293_v62  ;;  %v262_v0 = vadd.f32 %v290_v57, %v253_v63 }
 0x305   :  { %v294_v1 = vpack.c.bf16 %v262_v0, %v262_v0 }
 0x307   :  { %273 = vst.msk [vmem:[%s446_s8 + $0x4] sm:$0xf] %vm271_vm3, %v294_v1 }

// kernel: transformer_forward.26
= control target key start
LH: loop header
LB: loop body
LE: loop exit
PB: predicated region body
PF: predicated region fallthrough
CT: control target
= control target key end

     0   :  { %s904_s12 = smov 0   ;;  %s999_s0 = inlined_call_operand.vmem [shape: bf16[2,8,32], index: 0, kind: input, shape index: {}]   ;;  %s1000_s1 = inlined_call_operand.vmem [shape: bf16[2,8,32], index: 1, kind: input, shape index: {}]   ;;  %s1001_s2 = inlined_call_operand.vmem [shape: bf16[2,8,32], index: 2, kind: input, shape index: {}]   ;;  %s1002_s3 = inlined_call_operand.vmem [shape: bf16[2,8,32], index: 3, kind: output, shape index: {}]  }
   0x1 LB: > { %s748_s13 = sadd.s32 4294967295, %s874_s12   ;;  %p752_p0 = scmp.ge.s32.totalorder %s874_s12, 1  ;;  %s874_s12 = sphi %s904_s12, %s13_s12  }
   0x2   : > { %p154_p1 = scmp.lt.s32.totalorder %s874_s12, 3 }
   0x4   : > { %p155_p2 = pnand %p752_p0, %p154_p1 }
   0x5   : > { %p184_p3 = scmp.lt.s32.totalorder (!%p155_p2), %s748_s13, 1  ;;  %v876_v0 = vmov (!%p155_p2), 0.0   ;;  %vm877_vm0 = vmmov (!%p155_p2), 0   ;;  %vm206_vm1 = vcmask (!%p155_p2), 64512   ;;  %s878_s21 = smov (!%p155_p2), 120   ;;  %vm268_vm2 = vcmask (!%p155_p2), 1043456  }
   0x6   : > { %158 = sbr.rel (%p155_p2) target bundleno = 1473 (0x5c1), region = 32  ;;  %786 = vmatprep.subr.bf16.mxu0 (!%p155_p2), %v876_v0  ;;  %788 = vmatprep.mubr.msk.bf16.mxu0 (!%p155_p2), %vm877_vm0, %v876_v0  ;;  %s879_s22 = smov (!%p155_p2), 112   ;;  %vm664_vm3 = vcmask (!%p155_p2), 130048   ;;  %vm666_vm4 = vcmask (!%p155_p2), 195584   ;;  %vm669_vm5 = vcmask (!%p155_p2), 257024  }
   0x7   : > { %792 = vmatprep.subr.bf16.mxu1 (!%p155_p2), %v876_v0  ;;  %794 = vmatprep.mubr.msk.bf16.mxu1 (!%p155_p2), %vm877_vm0, %v876_v0  ;;  %s880_s23 = smov (!%p155_p2), 104   ;;  %s881_s27 = smov (!%p155_p2), 8  }
   0x8   : > { %s882_s28 = smov (!%p155_p2), 16   ;;  %s883_s29 = smov (!%p155_p2), 24  }
   0xd   : > { %s1004_s13 = smov (!%p184_p3, %s748_s13), 1 }
   0xe   : > { %s918_s14 = sshll.u32 %s1004_s13, 2 }
   0xf   : > { %s191_s17 = scalar_lea.vmem %s1000_s1, %s918_s14  ;;  %s187_s20 = scalar_lea.vmem %s999_s0, %s918_s14 }
  0x10   : > { %v204_v1 = vld [vmem:[%s191_s17] sm:$0xf]  ;;  %s195_s26 = scalar_lea.vmem %s1001_s2, %s918_s14  ;;  %s199_s5 = scalar_lea.vmem %s1002_s3, %s918_s14 }
  0x11   : > { %v211_v2 = vsel %vm206_vm1, %v204_v1, 0  ;;  %v202_v3 = vld [vmem:[%s187_s20] sm:$0xf]  ;;  %v760_v10 = vcombine.low %v204_v1, %v204_v1 }
  0x12   : > { %787 = vmatpush3.bf16.xpose.msra.mxu0 %v211_v2  ;;  %v203_v4 = vmul.bf16 1052065461, %v202_v3  ;;  %v944_v17 = vld [vmem:[%s195_s26] sm:$0xf] }
  0x13   : > { %804 = vmatprep.subr.bf16.mxu0 %v876_v0  ;;  %320 = vrot.lane.b32.xlu1 %v760_v10, %s878_s21  ;;  %v270_v18 = vsel %vm268_vm2, %v944_v17, 0  ;;  %v762_v61 = vcombine.low %v944_v17, %v944_v17 }
  0x14   : > { %v759_v11 = vcombine.low %v203_v4, %v203_v4  ;;  %793 = vmatpush3.bf16.msra.mxu1 %v270_v18 }
  0x15   : > { %798 = vmatprep.subr.bf16.mxu1 %v876_v0 }
  0x17   : > { %315 = vrot.lane.b32.xlu1 %v759_v11, %s878_s21 }
  0x19   : > { %789 = vmatmul.mubr.msk.bf16.vlgmr.msra.gmra.mrb[0].mxu0 %vm206_vm1, %v203_v4 }
  0x1a   : > { %806 = vmatprep.mubr.msk.bf16.mxu0 %vm877_vm0, %v876_v0 }
  0x1b   : > { %431 = vrot.lane.b32.xlu1 %v759_v11, %s879_s22 }
  0x1f   : > { %543 = vrot.lane.b32.xlu1 %v760_v10, %s880_s23 }
  0x23   : > { %541 = vrot.lane.b32.xlu1 %v759_v11, %s880_s23 }
  0x85   : > { %v321_v21 = vpop.permute.xlu1 %320 }
  0x86   : > { %v326_v23 = vsel %vm206_vm1, %v321_v21, 0 }
  0x89   : > { %v316_v25 = vpop.permute.xlu1 %315 }
  0x8d   : > { %v432_v27 = vpop.permute.xlu1 %431 }
  0x91   : > { %v544_v29 = vpop.permute.xlu1 %543 }
  0x92   : > { %v549_v30 = vsel %vm206_vm1, %v544_v29, 0 }
  0x95   : > { %v542_v31 = vpop.permute.xlu1 %541 }
  0xec   : > { %v247_v5 = vpop.f32.mrb[0].mxu0 }
  0xed   : > { %v790_v6 = vpop.f32.mrb[1].mxu0  ;;  %v253_v7 = vsel %vm206_vm1, %v247_v5, -inf }
  0xee   : > { %254 = vmax.xlane.f32.xlu0 %v253_v7  ;;  %v250_v8 = vpop.f32.mrb[2].mxu0 }
  0xef   : > { %v791_v9 = vpop.f32.mrb[3].mxu0 }
 0x17b   : > { %v255_v12 = vpop.xlane.xlu0 %254 }
 0x17c   : > { %v256_v13 = vsub.f32 %v247_v5, %v255_v12 }
 0x17e   : > { %v257_v14 = vmul.f32 1.442695, %v256_v13 }
 0x180   : > { %852 = vpow2.f32 %v257_v14 }
 0x18a   : > { %v853_v15 = vpop.eup %852 }
 0x18b   : > { %v259_v16 = vsel %vm206_vm1, %v853_v15, 0.0 }
 0x18c   : > { %260 = vadd.xlane.f32.xlu0 %v259_v16 }
 0x1a2   : > { %433 = vrot.lane.b32.xlu0 %v760_v10, %s879_s22 }
 0x219   : > { %v261_v19 = vpop.xlane.xlu0 %260 }
 0x21a   : > { %854 = vrcp.f32 %v261_v19 }
 0x21d   : > { %v434_v26 = vpop.permute.xlu0 %433 }
 0x21e   : > { %v439_v28 = vsel %vm206_vm1, %v434_v26, 0 }
 0x224   : > { %v855_v20 = vpop.eup %854 }
 0x225   : > { %v263_v22 = vmul.f32 %v855_v20, %v853_v15 }
 0x227   : > { %v264_v24 = vpack.c.bf16 %v263_v22, %v263_v22 }
 0x229   : > { %795 = vmatmul.mubr.msk.bf16.vlgmr.msra.gmra.mrb[0].mxu1 %vm206_vm1, %v264_v24 }
 0x22a   : > { %799 = vmatpush3.bf16.xpose.msra.mxu1 %v326_v23  ;;  %800 = vmatprep.mubr.msk.bf16.mxu1 %vm877_vm0, %v876_v0 }
 0x22b   : > { %810 = vmatprep.subr.bf16.mxu1 %v876_v0 }
 0x231   : > { %801 = vmatmul.mubr.msk.bf16.vlgmr.msra.gmra.mrb[4].mxu1 %vm206_vm1, %v316_v25 }
 0x232   : > { %811 = vmatpush3.bf16.xpose.msra.mxu1 %v439_v28  ;;  %812 = vmatprep.mubr.msk.bf16.mxu1 %vm877_vm0, %v876_v0 }
 0x233   : > { %822 = vmatprep.subr.bf16.mxu1 %v876_v0 }
 0x239   : > { %813 = vmatmul.mubr.msk.bf16.vlgmr.msra.gmra.mrb[8].mxu1 %vm206_vm1, %v432_v27 }
 0x23a   : > { %823 = vmatpush3.bf16.xpose.msra.mxu1 %v549_v30  ;;  %824 = vmatprep.mubr.msk.bf16.mxu1 %vm877_vm0, %v876_v0 }
 0x241   : > { %825 = vmatmul.mubr.msk.bf16.vlgmr.msra.gmra.mrb[12].mxu1 %vm206_vm1, %v542_v31 }
 0x2fc   : > { %v965_v32 = vpop.f32.mrb[0].mxu1 }
 0x2fd   : > { %v796_v33 = vpop.f32.mrb[1].mxu1 }
 0x2fe   : > { %v309_v34 = vpop.f32.mrb[2].mxu1 }
 0x2ff   : > { %v797_v35 = vpop.f32.mrb[3].mxu1 }
 0x304   : > { %v362_v36 = vpop.f32.mrb[4].mxu1 }
 0x305   : > { %v802_v37 = vpop.f32.mrb[5].mxu1  ;;  %v368_v38 = vsel %vm206_vm1, %v362_v36, -inf }
 0x306   : > { %369 = vmax.xlane.f32.xlu1 %v368_v38  ;;  %v365_v39 = vpop.f32.mrb[6].mxu1 }
 0x307   : > { %v803_v40 = vpop.f32.mrb[7].mxu1 }
 0x30c   : > { %v475_v41 = vpop.f32.mrb[8].mxu1 }
 0x30d   : > { %v481_v42 = vsel %vm206_vm1, %v475_v41, -inf  ;;  %v814_v43 = vpop.f32.mrb[9].mxu1 }
 0x30e   : > { %482 = vmax.xlane.f32.xlu0 %v481_v42  ;;  %v478_v44 = vpop.f32.mrb[10].mxu1 }
 0x30f   : > { %v815_v45 = vpop.f32.mrb[11].mxu1 }
 0x314   : > { %v585_v46 = vpop.f32.mrb[12].mxu1 }
 0x315   : > { %v591_v47 = vsel %vm206_vm1, %v585_v46, -inf  ;;  %v826_v48 = vpop.f32.mrb[13].mxu1 }
 0x316   : > { %592 = vmax.xlane.f32.xlu1 %v591_v47  ;;  %v588_v49 = vpop.f32.mrb[14].mxu1 }
 0x317   : > { %v827_v50 = vpop.f32.mrb[15].mxu1 }
 0x393   : > { %v370_v51 = vpop.xlane.xlu1 %369 }
 0x394   : > { %v371_v52 = vsub.f32 %v362_v36, %v370_v51 }
 0x396   : > { %v372_v53 = vmul.f32 1.442695, %v371_v52 }
 0x398   : > { %856 = vpow2.f32 %v372_v53 }
 0x39b   : > { %v483_v54 = vpop.xlane.xlu0 %482 }
 0x39c   : > { %v484_v55 = vsub.f32 %v475_v41, %v483_v54 }
 0x39e   : > { %v485_v56 = vmul.f32 1.442695, %v484_v55 }
 0x3a0   : > { %858 = vpow2.f32 %v485_v56 }
 0x3a2   : > { %v857_v57 = vpop.eup %856 }
 0x3a3   : > { %v374_v58 = vsel %vm206_vm1, %v857_v57, 0.0  ;;  %v593_v62 = vpop.xlane.xlu1 %592 }
 0x3a4   : > { %375 = vadd.xlane.f32.xlu1 %v374_v58  ;;  %v594_v63 = vsub.f32 %v585_v46, %v593_v62 }
 0x3a6   : > { %v595_v1 = vmul.f32 1.442695, %v594_v63 }
 0x3a8   : > { %860 = vpow2.f32 %v595_v1 }
 0x3aa   : > { %v859_v59 = vpop.eup %858 }
 0x3ab   : > { %v487_v60 = vsel %vm206_vm1, %v859_v59, 0.0 }
 0x3ac   : > { %488 = vadd.xlane.f32.xlu0 %v487_v60 }
 0x3b2   : > { %v861_v2 = vpop.eup %860 }
 0x3b3   : > { %v597_v3 = vsel %vm206_vm1, %v861_v2, 0.0 }
 0x3b5   : > { %493 = vrot.lane.b32.xlu1 %v762_v61, %s879_s22 }
 0x3c2   : > { %383 = vrot.lane.b32.xlu0 %v762_v61, %s878_s21 }
 0x3d9   : > { %598 = vadd.xlane.f32.xlu1 %v597_v3 }
 0x3ea   : > { %603 = vrot.lane.b32.xlu1 %v762_v61, %s880_s23 }
 0x431   : > { %v376_v4 = vpop.xlane.xlu1 %375 }
 0x432   : > { %862 = vrcp.f32 %v376_v4 }
 0x435   : > { %v494_v10 = vpop.permute.xlu1 %493 }
 0x436   : > { %v499_v12 = vsel %vm268_vm2, %v494_v10, 0 }
 0x439   : > { %v489_v5 = vpop.xlane.xlu0 %488 }
 0x43a   : > { %864 = vrcp.f32 %v489_v5 }
 0x43c   : > { %v863_v6 = vpop.eup %862 }
 0x43d   : > { %v378_v7 = vmul.f32 %v863_v6, %v857_v57  ;;  %v384_v8 = vpop.permute.xlu0 %383 }
 0x43e   : > { %v389_v9 = vsel %vm268_vm2, %v384_v8, 0 }
 0x43f   : > { %805 = vmatpush3.bf16.msra.mxu0 %v389_v9  ;;  %v379_v11 = vpack.c.bf16 %v378_v7, %v378_v7 }
 0x440   : > { %816 = vmatprep.subr.bf16.mxu0 %v876_v0 }
 0x442   : > { %807 = vmatmul.mubr.msk.bf16.vlgmr.msra.gmra.mrb[4].mxu0 %vm206_vm1, %v379_v11 }
 0x443   : > { %817 = vmatpush3.bf16.msra.mxu0 %v499_v12  ;;  %818 = vmatprep.mubr.msk.bf16.mxu0 %vm877_vm0, %v876_v0 }
 0x444   : > { %v865_v13 = vpop.eup %864  ;;  %828 = vmatprep.subr.bf16.mxu0 %v876_v0 }
 0x445   : > { %v491_v14 = vmul.f32 %v865_v13, %v859_v59 }
 0x447   : > { %v492_v15 = vpack.c.bf16 %v491_v14, %v491_v14 }
 0x44a   : > { %819 = vmatmul.mubr.msk.bf16.vlgmr.msra.gmra.mrb[8].mxu0 %vm206_vm1, %v492_v15 }
 0x44b   : > { %830 = vmatprep.mubr.msk.bf16.mxu0 %vm877_vm0, %v876_v0 }
 0x466   : > { %v599_v16 = vpop.xlane.xlu1 %598 }
 0x467   : > { %866 = vrcp.f32 %v599_v16 }
 0x46a   : > { %v604_v17 = vpop.permute.xlu1 %603 }
 0x46b   : > { %v609_v18 = vsel %vm268_vm2, %v604_v17, 0 }
 0x46c   : > { %829 = vmatpush3.bf16.msra.mxu0 %v609_v18 }
 0x471   : > { %v867_v19 = vpop.eup %866 }
 0x472   : > { %v601_v20 = vmul.f32 %v867_v19, %v861_v2 }
 0x474   : > { %v602_v21 = vpack.c.bf16 %v601_v20, %v601_v20 }
 0x476   : > { %831 = vmatmul.mubr.msk.bf16.vlgmr.msra.gmra.mrb[12].mxu0 %vm206_vm1, %v602_v21 }
 0x515   : > { %v425_v22 = vpop.f32.mrb[4].mxu0 }
 0x516   : > { %652 = vrot.lane.b32.xlu0 %v425_v22, %s881_s27  ;;  %v808_v23 = vpop.f32.mrb[5].mxu0 }
 0x517   : > { %v428_v24 = vpop.f32.mrb[6].mxu0 }
 0x518   : > { %v809_v25 = vpop.f32.mrb[7].mxu0 }
 0x51d   : > { %v535_v26 = vpop.f32.mrb[8].mxu0 }
 0x51e   : > { %656 = vrot.lane.b32.xlu1 %v535_v26, %s882_s28  ;;  %v820_v0 = vpop.f32.mrb[9].mxu0 }
 0x51f   : > { %v538_v27 = vpop.f32.mrb[10].mxu0 }
 0x520   : > { %v821_v28 = vpop.f32.mrb[11].mxu0 }
 0x549   : > { %v645_v29 = vpop.f32.mrb[12].mxu0 }
 0x54a   : > { %660 = vrot.lane.b32.xlu0 %v645_v29, %s883_s29  ;;  %v832_v30 = vpop.f32.mrb[13].mxu0 }
 0x54b   : > { %v648_v31 = vpop.f32.mrb[14].mxu0 }
 0x54c   : > { %v833_v33 = vpop.f32.mrb[15].mxu0 }
 0x588   : > { %v653_v34 = vpop.permute.xlu0 %652 }
 0x589   : > { %v663_v36 = vsel %vm206_vm1, %v965_v32, %v653_v34 }
 0x590   : > { %v657_v35 = vpop.permute.xlu1 %656 }
 0x591   : > { %v665_v37 = vsel %vm664_vm3, %v663_v36, %v657_v35 }
 0x5bc   : > { %v661_v38 = vpop.permute.xlu0 %660 }
 0x5bd   : > { %v667_v39 = vsel %vm666_vm4, %v665_v37, %v661_v38 }
 0x5be   : > { %v668_v40 = vpack.c.bf16 %v667_v39, %v667_v39 }
 0x5c0   : > { %670 = vst.msk [vmem:[%s199_s5] sm:$0xf] %vm669_vm5, %v668_v40 }
 0x5c1 PF: > { %s13_s12 = sadd.s32 1, %s874_s12  }
 0x5c2   : > { %p10_p4 = scmp.ge.s32.totalorder %s13_s12, 4  }
 0x5c4   :  { %12 = sbr.rel (!%p10_p4) target bundleno = 1 (0x1), region = 68 }

// kernel: transformer_forward.49
= control target key start
LH: loop header
LB: loop body
LE: loop exit
PB: predicated region body
PF: predicated region fallthrough
CT: control target
= control target key end

     0   :  { %v178_v1 = vmov 0.0   ;;  %vm179_vm0 = vmmov 0   ;;  %vm20_vm1 = vcmask 162816   ;;  %s233_s0 = inlined_call_operand.vmem [shape: bf16[16,32], index: 0, kind: input, shape index: {}]   ;;  %s234_s1 = inlined_call_operand.vmem [shape: bf16[32,20], index: 1, kind: input, shape index: {}]   ;;  %s235_s2 = inlined_call_operand.vmem [shape: f32[1,20], index: 2, kind: input, shape index: {}]   ;;  %s236_s3 = inlined_call_operand.hbm [shape: f32[16,20], index: 3, kind: output, shape index: {}]  }
   0x1   :  { %v151_v0 = vld [vmem:[%s234_s1] sm:$0xff]   ;;  %138 = vmatprep.subr.bf16.mxu0 %v178_v1  ;;  %v152_v2 = vld [vmem:[%s234_s1 + $0x8] sm:$0xff]   ;;  %142 = vmatprep.mubr.msk.bf16.mxu0 %vm179_vm0, %v178_v1 }
   0x2   :  { %139 = vmatpush3.bf16.msra.mxu0 %v151_v0 }
   0x3   :  { %140 = vmatprep.subr.bf16.mxu0 %v178_v1 }
   0x4   :  { %8 = vsyncpa [#allocation4], 0  ;;  %21 = vst.msk [vmem:[#allocation2] sm:$0xff] %vm20_vm1, %v178_v1  ;;  %v153_v3 = vld [vmem:[%s233_s0] sm:$0xff]   ;;  %vm48_vm2 = vcmask 261120   ;;  %s180_s0 = smov [#allocation3]  }
   0x5   :  { %22 = vst.msk [vmem:[#allocation2 + $0x8] sm:$0xff] %vm20_vm1, %v178_v1  ;;  %v134_v12 = vld [vmem:[%s235_s2] ss:$0 sm:$0xff]  ;;  %s119_s19 = sshll.u32 %s180_s0, 4  ;;  %s120_s19 = int_to_ptr.vmem [resolvable:$true] %s119_s19 }
   0x6   :  { %141 = vmatpush3.bf16.msra.mxu0 %v152_v2  ;;  %s154_s20 = scalar_lea.vmem %s120_s19, 256  ;;  %p159_p1 = scmp.lt.s32.totalorder %s120_s19, %s120_s19 }
   0x7   :  { %p155_p0 = scmp.ne.s32.totalorder %s120_s19, %s154_s20  ;;  %p160_p2 = scmp.lt.s32.totalorder %s154_s20, %s154_s20 }
   0x9   :  { %143 = vmatmul.mubr.msk.bf16.vlgmr.msra.gmra.mrb[0].mxu0 %vm48_vm2, %v153_v3  ;;  %p161_p3 = por %p160_p2, %p159_p1 }
   0xb   :  { %v23_v4 = vld [vmem:[#allocation2] sm:$0xff]  ;;  %p162_p4 = pnand %p161_p3, %p155_p0 }
   0xc   :  { %v24_v6 = vld [vmem:[#allocation2 + $0x8] sm:$0xff] }
  0xdc   :  { %v86_v5 = vpop.f32.mrb[0].mxu0 }
  0xdd   :  { %v93_v7 = vadd.f32 %v86_v5, %v23_v4  ;;  %v144_v8 = vpop.f32.mrb[1].mxu0 }
  0xde   :  { %v89_v9 = vpop.f32.mrb[2].mxu0 }
  0xdf   :  { %96 = vst.msk [vmem:[#allocation2] sm:$0xff] %vm20_vm1, %v93_v7  ;;  %v94_v10 = vadd.f32 %v89_v9, %v24_v6  ;;  %v145_v11 = vpop.f32.mrb[3].mxu0 }
  0xe1   :  { %97 = vst.msk [vmem:[#allocation2 + $0x8] sm:$0xff] %vm20_vm1, %v94_v10 }
  0xe6   :  { %v101_v13 = vld [vmem:[#allocation2] sm:$0xff] }
  0xe7   :  { %v110_v14 = vadd.f32 %v134_v12, %v101_v13 }
  0xe8   :  { %v102_v15 = vld [vmem:[#allocation2 + $0x8] sm:$0xff] }
  0xe9   :  { %v111_v16 = vadd.f32 %v134_v12, %v102_v15  ;;  %112 = vst.msk [vmem:[#allocation3] sm:$0xff] %vm20_vm1, %v110_v14 }
  0xeb   :  { %113 = vst.msk [vmem:[#allocation3 + $0x8] sm:$0xff] %vm20_vm1, %v111_v16 }
  0xec   :  { %165 = shalt.err (!%p162_p4)
}
  0xed   :  { %s166_s22 = scalar_lea.hbm %s236_s3, 256 }
  0xee   :  { %p167_p5 = scmp.ne.s32.totalorder %s236_s3, %s166_s22  ;;  %p170_p6 = scmp.lt.u32.totalorder %s166_s22, %s236_s3 }
  0xf0   :  { %p172_p7 = pnand %p170_p6, %p167_p5 }
  0xf2   :  { %175 = shalt.err (!%p172_p7)
}
  0xf3   :  { %s181_s27 = smov 128   ;;  %s182_s28 = smov 8  }
  0xf4   :  { %125 = dma.vmem_to_hbm [thread:$0]  %s120_s19, 256, %s236_s3, [#allocation4], %s181_s27, %s181_s27, %s182_s28  }
  0xf5   :  { %176 = dma.done.wait [#allocation4], 256  }
  0xf6   :  { %177 = vsyncadd [#allocation4], 4294967040 }
  0xf7   :  { %129 = vsyncpa [#allocation4], 1 }

</bundles_post_ra>
